<compile_context>
chip_gen: v5e
topology: v5e:2x2
jax: 0.10.0
libtpu: 0.0.40
codegen_flags: <defaults>
</compile_context>

<pallas_src>
import jax
import jax.numpy as jnp
from jax.experimental import pallas as pl
from jax.experimental.pallas import tpu as pltpu

# ----------------------------- configuration ---------------------------------
B      = 8          # batch size for the example
C_IN   = 512        # channels (fc1 expects 512 flattened features)
T_IN   = 4          # temporal extent averaged away by temp_avg
H_IN   = 1          # spatial dims must be 1 so that flatten(1) gives 512
W_IN   = 1
D_OUT  = 128        # final_embedding_size
BN_EPS = 1e-5
L2_EPS = 1e-12      # F.normalize default eps


# ----------------------------- fused Pallas kernel ---------------------------
def mlp_kernel(x_ref, w1_ref, b1_ref, w2_ref, b2_ref, o_ref):
    # x_ref: (tb, T, 512) f32, channels-last.  Temporal mean via static slice
    # adds (VPU) instead of a cross-sublane reduce; 1/T applied once.
    t = x_ref.shape[1]
    xs = x_ref[:, 0, :]
    for tt in range(1, t):
        xs = xs + x_ref[:, tt, :]
    x = (xs * (1.0 / t)).astype(jnp.bfloat16)                       # (tb, 512)

    # fc1 + folded bn1 + relu   (bf16 operands, f32 MXU accumulation)
    h = jnp.dot(x, w1_ref[...], preferred_element_type=jnp.float32) + b1_ref[...]
    h = jnp.maximum(h, 0.0).astype(jnp.bfloat16)                    # (tb, 512)

    # fc2 (no bias) + folded bn2
    z = jnp.dot(h, w2_ref[...], preferred_element_type=jnp.float32) + b2_ref[...]

    # F.normalize(p=2, dim=1): z / max(||z||, eps) == z * rsqrt(max(sum z^2, eps^2))
    ssq = jnp.sum(z * z, axis=-1, keepdims=True)
    o_ref[...] = z * jax.lax.rsqrt(jnp.maximum(ssq, L2_EPS * L2_EPS))


def mlp_forward(x_btc, folded, *, block_b=128):
    """x_btc: (B, T, 512) float32, channels-last.  Returns (B, 128) L2-normalized f32."""
    b, t, c = x_btc.shape
    assert c == C_IN, "mlp.fc1 expects 512 flattened features"
    w1, b1, w2, b2 = folded

    # One batch tile if B <= block_b (grid of 1); otherwise tile the batch and
    # keep the weights VMEM-resident across grid steps via constant index_maps.
    tb = b if b <= block_b else block_b
    assert b % tb == 0, "batch must be a multiple of the batch tile"
    grid = (b // tb,)

    return pl.pallas_call(
        mlp_kernel,
        out_shape=jax.ShapeDtypeStruct((b, D_OUT), jnp.float32),
        grid=grid,
        in_specs=[
            pl.BlockSpec((tb, t, c),     lambda i: (i, 0, 0)),   # activations: per-tile
            pl.BlockSpec((c, c),         lambda i: (0, 0)),      # w1': resident
            pl.BlockSpec((1, c),         lambda i: (0, 0)),      # b1': resident
            pl.BlockSpec((c, D_OUT),     lambda i: (0, 0)),      # w2': resident
            pl.BlockSpec((1, D_OUT),     lambda i: (0, 0)),      # b2': resident
        ],
        out_specs=pl.BlockSpec((tb, D_OUT), lambda i: (i, 0)),   # lane-dense (tb,128)
        compiler_params=pltpu.CompilerParams(
            # "arbitrary": with small per-tile batches, megacore-parallel would
            # duplicate the weight DMA per core; flip to "parallel" only when
            # per-core batch >= ~128 rows (v7x).
            dimension_semantics=("arbitrary",)),
    )(x_btc, w1, b1, w2, b2)


# ----------------------------- host-side parameter prep ----------------------
def fold_bn_params(p):
    """Fold eval-mode BatchNorms into the Linear weights/biases (PyTorch layout in).

    p holds PyTorch-layout tensors: fc1_w (512,512)=(out,in), fc1_b (512,),
    bn1_{g,b,m,v} (512,), fc2_w (128,512)=(out,in), bn2_{g,b,m,v} (128,).
    Returns (w1', b1', w2', b2') with weights transposed to (in, out) and bf16.
    """
    s1 = p["bn1_g"] * jax.lax.rsqrt(p["bn1_v"] + BN_EPS)                    # (512,)
    w1 = (p["fc1_w"].T * s1[None, :]).astype(jnp.bfloat16)                  # (512, 512)
    b1 = ((p["fc1_b"] - p["bn1_m"]) * s1 + p["bn1_b"]).reshape(1, C_IN)     # (1, 512) f32

    s2 = p["bn2_g"] * jax.lax.rsqrt(p["bn2_v"] + BN_EPS)                    # (128,)
    w2 = (p["fc2_w"].T * s2[None, :]).astype(jnp.bfloat16)                  # (512, 128)
    b2 = (p["bn2_b"] - p["bn2_m"] * s2).reshape(1, D_OUT)                   # (1, 128) f32
    return w1, b1.astype(jnp.float32), w2, b2.astype(jnp.float32)


def to_channels_last(x):
    """Producer-side compatibility shim: (B, C, T, 1, 1) -> (B, T, C).

    In production the backbone should emit channels-last directly so this extra
    transpose kernel never runs (it is pure overhead for a us-scale head)."""
    b, c, t, h, w = x.shape
    assert h == 1 and w == 1, \
        "AdaptiveAvgPool3d((1,None,None)) + flatten(1) path requires H == W == 1"
    assert c == C_IN
    return jnp.transpose(x.reshape(b, c, t), (0, 2, 1))


def init_params(key):
    """Random parameters in PyTorch layout (nn.Linear weight is (out, in))."""
    ks = jax.random.split(key, 11)
    sc = 1.0 / (512.0 ** 0.5)
    return {
        "fc1_w": sc * jax.random.normal(ks[0], (C_IN, C_IN), jnp.float32),   # (out, in)
        "fc1_b": 0.02 * jax.random.normal(ks[1], (C_IN,), jnp.float32),
        "bn1_g": 1.0 + 0.1 * jax.random.normal(ks[2], (C_IN,), jnp.float32),
        "bn1_b": 0.1 * jax.random.normal(ks[3], (C_IN,), jnp.float32),
        "bn1_m": 0.1 * jax.random.normal(ks[4], (C_IN,), jnp.float32),
        "bn1_v": 1.0 + 0.1 * jnp.abs(jax.random.normal(ks[5], (C_IN,), jnp.float32)),
        "fc2_w": sc * jax.random.normal(ks[6], (D_OUT, C_IN), jnp.float32),  # (out, in)
        "bn2_g": 1.0 + 0.1 * jax.random.normal(ks[7], (D_OUT,), jnp.float32),
        "bn2_b": 0.1 * jax.random.normal(ks[8], (D_OUT,), jnp.float32),
        "bn2_m": 0.1 * jax.random.normal(ks[9], (D_OUT,), jnp.float32),
        "bn2_v": 1.0 + 0.1 * jnp.abs(jax.random.normal(ks[10], (D_OUT,), jnp.float32)),
    }


def reference_forward(x_5d, p):
    """Pure-JAX f32 reference of the PyTorch eval-mode forward (for validation)."""
    b = x_5d.shape[0]
    xm = jnp.mean(x_5d, axis=2).reshape(b, -1)                              # temp_avg + flatten
    h = xm @ p["fc1_w"].T + p["fc1_b"]
    h = (h - p["bn1_m"]) * p["bn1_g"] * jax.lax.rsqrt(p["bn1_v"] + BN_EPS) + p["bn1_b"]
    h = jnp.maximum(h, 0.0)
    z = h @ p["fc2_w"].T
    z = (z - p["bn2_m"]) * p["bn2_g"] * jax.lax.rsqrt(p["bn2_v"] + BN_EPS) + p["bn2_b"]
    n = jnp.sqrt(jnp.sum(z * z, axis=1, keepdims=True))
    return z / jnp.maximum(n, L2_EPS)


# ----------------------------- main -------------------------------------------
if __name__ == "__main__":
    key = jax.random.PRNGKey(0)
    k_in, k_par = jax.random.split(key)

    # PyTorch-shaped input (B, C, T, H, W) with H = W = 1.
    x = jax.random.normal(k_in, (B, C_IN, T_IN, H_IN, W_IN), dtype=jnp.float32)
    params = init_params(k_par)

    folded = fold_bn_params(params)        # once per checkpoint, not per call
    x_btc = to_channels_last(x)            # producer-side layout (see shim docstring)

    out = mlp_forward(x_btc, folded)
    jax.block_until_ready(out)

    # Validate against the f32 eval-mode reference (bf16 weights -> small drift).
    ref = reference_forward(x, params)
    assert out.shape == (B, D_OUT)
    assert bool(jnp.all(jnp.isfinite(out)))
    norms = jnp.sqrt(jnp.sum(out * out, axis=-1))
    assert bool(jnp.all(jnp.abs(norms - 1.0) < 1e-3)), "rows must be L2-normalized"
    assert bool(jnp.max(jnp.abs(out - ref)) < 2e-2), "mismatch vs f32 reference"
    print("KERNEL_OK")
</pallas_src>

<mosaic_0001>
module attributes {stable_mosaic.version = 11 : i64} {
  func.func @mlp_kernel(%arg0: i32, %arg1: memref<8x4x512xf32, #tpu.memory_space<vmem>>, %arg2: memref<512x512xbf16, #tpu.memory_space<vmem>>, %arg3: memref<1x512xf32, #tpu.memory_space<vmem>>, %arg4: memref<512x128xbf16, #tpu.memory_space<vmem>>, %arg5: memref<1x128xf32, #tpu.memory_space<vmem>>, %arg6: memref<8x128xf32, #tpu.memory_space<vmem>>) attributes {dimension_semantics = [#tpu.dimension_semantics<arbitrary>], iteration_bounds = array<i64: 1>, scalar_prefetch = 0 : i64, scratch_operands = 0 : i64, tpu.core_type = #tpu.core_type<tc>, window_params = [{transform_indices = @transform_0, window_bounds = array<i64: 8, 4, 512>}, {pipeline_mode = #tpu.pipeline_mode<synchronous>, transform_indices = @transform_1, window_bounds = array<i64: 512, 512>}, {pipeline_mode = #tpu.pipeline_mode<synchronous>, transform_indices = @transform_2, window_bounds = array<i64: 1, 512>}, {pipeline_mode = #tpu.pipeline_mode<synchronous>, transform_indices = @transform_3, window_bounds = array<i64: 512, 128>}, {pipeline_mode = #tpu.pipeline_mode<synchronous>, transform_indices = @transform_4, window_bounds = array<i64: 1, 128>}, {transform_indices = @transform_5, window_bounds = array<i64: 8, 128>}]} {
    %c0 = arith.constant 0 : index
    %c0_0 = arith.constant 0 : index
    %c0_1 = arith.constant 0 : index
    %0 = vector.load %arg1[%c0, %c0_0, %c0_1] : memref<8x4x512xf32, #tpu.memory_space<vmem>>, vector<8x1x512xf32>
    %1 = vector.shape_cast %0 : vector<8x1x512xf32> to vector<8x512xf32>
    %c0_2 = arith.constant 0 : index
    %c1 = arith.constant 1 : index
    %c0_3 = arith.constant 0 : index
    %2 = vector.load %arg1[%c0_2, %c1, %c0_3] : memref<8x4x512xf32, #tpu.memory_space<vmem>>, vector<8x1x512xf32>
    %3 = vector.shape_cast %2 : vector<8x1x512xf32> to vector<8x512xf32>
    %4 = arith.addf %1, %3 : vector<8x512xf32>
    %c0_4 = arith.constant 0 : index
    %c2 = arith.constant 2 : index
    %c0_5 = arith.constant 0 : index
    %5 = vector.load %arg1[%c0_4, %c2, %c0_5] : memref<8x4x512xf32, #tpu.memory_space<vmem>>, vector<8x1x512xf32>
    %6 = vector.shape_cast %5 : vector<8x1x512xf32> to vector<8x512xf32>
    %7 = arith.addf %4, %6 : vector<8x512xf32>
    %c0_6 = arith.constant 0 : index
    %c3 = arith.constant 3 : index
    %c0_7 = arith.constant 0 : index
    %8 = vector.load %arg1[%c0_6, %c3, %c0_7] : memref<8x4x512xf32, #tpu.memory_space<vmem>>, vector<8x1x512xf32>
    %9 = vector.shape_cast %8 : vector<8x1x512xf32> to vector<8x512xf32>
    %10 = arith.addf %7, %9 : vector<8x512xf32>
    %cst = arith.constant 2.500000e-01 : f32
    %11 = vector.broadcast %cst : f32 to vector<8x512xf32>
    %12 = arith.mulf %10, %11 : vector<8x512xf32>
    %13 = arith.truncf %12 : vector<8x512xf32> to vector<8x512xbf16>
    %c0_8 = arith.constant 0 : index
    %c0_9 = arith.constant 0 : index
    %14 = vector.load %arg2[%c0_8, %c0_9] : memref<512x512xbf16, #tpu.memory_space<vmem>>, vector<512x512xbf16>
    %cst_10 = arith.constant dense<0.000000e+00> : vector<8x512xf32>
    %15 = tpu.matmul %13, %14, %cst_10 {dimension_numbers = #tpu.dot_dimension_numbers<[1], [0], [0], [1], [0, 0, 1, 1], [], []>} : vector<8x512xbf16>, vector<512x512xbf16>, vector<8x512xf32> -> vector<8x512xf32>
    %c0_11 = arith.constant 0 : index
    %c0_12 = arith.constant 0 : index
    %16 = vector.load %arg3[%c0_11, %c0_12] : memref<1x512xf32, #tpu.memory_space<vmem>>, vector<1x512xf32>
    %17 = vector.broadcast %16 : vector<1x512xf32> to vector<8x512xf32>
    %18 = arith.addf %15, %17 : vector<8x512xf32>
    %cst_13 = arith.constant 0.000000e+00 : f32
    %19 = vector.broadcast %cst_13 : f32 to vector<8x512xf32>
    %20 = arith.maximumf %18, %19 : vector<8x512xf32>
    %21 = arith.truncf %20 : vector<8x512xf32> to vector<8x512xbf16>
    %c0_14 = arith.constant 0 : index
    %c0_15 = arith.constant 0 : index
    %22 = vector.load %arg4[%c0_14, %c0_15] : memref<512x128xbf16, #tpu.memory_space<vmem>>, vector<512x128xbf16>
    %cst_16 = arith.constant dense<0.000000e+00> : vector<8x128xf32>
    %23 = tpu.matmul %21, %22, %cst_16 {dimension_numbers = #tpu.dot_dimension_numbers<[1], [0], [0], [1], [0, 0, 1, 1], [], []>} : vector<8x512xbf16>, vector<512x128xbf16>, vector<8x128xf32> -> vector<8x128xf32>
    %c0_17 = arith.constant 0 : index
    %c0_18 = arith.constant 0 : index
    %24 = vector.load %arg5[%c0_17, %c0_18] : memref<1x128xf32, #tpu.memory_space<vmem>>, vector<1x128xf32>
    %25 = vector.broadcast %24 : vector<1x128xf32> to vector<8x128xf32>
    %26 = arith.addf %23, %25 : vector<8x128xf32>
    %27 = arith.mulf %26, %26 : vector<8x128xf32>
    %cst_19 = arith.constant dense<0.000000e+00> : vector<8xf32>
    %28 = vector.multi_reduction <add>, %27, %cst_19 [1] : vector<8x128xf32> to vector<8xf32>
    %29 = vector.shape_cast %28 : vector<8xf32> to vector<8x1xf32>
    %cst_20 = arith.constant 1.000000e-24 : f32
    %30 = vector.broadcast %cst_20 : f32 to vector<8x1xf32>
    %31 = arith.maximumf %29, %30 : vector<8x1xf32>
    %32 = math.rsqrt %31 : vector<8x1xf32>
    %33 = vector.broadcast %32 : vector<8x1xf32> to vector<8x128xf32>
    %34 = arith.mulf %26, %33 : vector<8x128xf32>
    %c0_21 = arith.constant 0 : index
    %c0_22 = arith.constant 0 : index
    %35 = vector.load %arg6[%c0_21, %c0_22] : memref<8x128xf32, #tpu.memory_space<vmem>>, vector<8x128xf32>
    tpu.vector_store %arg6[%c0_21, %c0_22], %34 {strides = array<i32>} : memref<8x128xf32, #tpu.memory_space<vmem>>, vector<8x128xf32>,
    return
  }
  func.func @transform_0(%arg0: i32) -> (i32, i32, i32) {
    %c0_i32 = arith.constant 0 : i32
    %c0_i32_0 = arith.constant 0 : i32
    %c0_i32_1 = arith.constant 0 : i32
    return %arg0, %c0_i32, %c0_i32_0 : i32, i32, i32
  }
  func.func @transform_1(%arg0: i32) -> (i32, i32) {
    %c0_i32 = arith.constant 0 : i32
    %c0_i32_0 = arith.constant 0 : i32
    %c0_i32_1 = arith.constant 0 : i32
    return %c0_i32, %c0_i32_0 : i32, i32
  }
  func.func @transform_2(%arg0: i32) -> (i32, i32) {
    %c0_i32 = arith.constant 0 : i32
    %c0_i32_0 = arith.constant 0 : i32
    %c0_i32_1 = arith.constant 0 : i32
    return %c0_i32, %c0_i32_0 : i32, i32
  }
  func.func @transform_3(%arg0: i32) -> (i32, i32) {
    %c0_i32 = arith.constant 0 : i32
    %c0_i32_0 = arith.constant 0 : i32
    %c0_i32_1 = arith.constant 0 : i32
    return %c0_i32, %c0_i32_0 : i32, i32
  }
  func.func @transform_4(%arg0: i32) -> (i32, i32) {
    %c0_i32 = arith.constant 0 : i32
    %c0_i32_0 = arith.constant 0 : i32
    %c0_i32_1 = arith.constant 0 : i32
    return %c0_i32, %c0_i32_0 : i32, i32
  }
  func.func @transform_5(%arg0: i32) -> (i32, i32) {
    %c0_i32 = arith.constant 0 : i32
    %c0_i32_0 = arith.constant 0 : i32
    return %arg0, %c0_i32 : i32, i32
  }
}

</mosaic_0001>

<bundles_post_ra>
// kernel: tpu_custom_call.1
= control target key start
LH: loop header
LB: loop body
LE: loop exit
PB: predicated region body
PF: predicated region fallthrough
CT: control target
= control target key end

     0   :  { %10 = vsyncpa [#allocation3], 0  ;;  %s2866_s0 = inlined_call_operand.hbm [shape: f32[8,4,512], index: 0, kind: input, shape index: {}]   ;;  %s2867_s1 = inlined_call_operand.hbm [shape: bf16[512,512], index: 1, kind: input, shape index: {}]   ;;  %s2868_s2 = inlined_call_operand.hbm [shape: f32[1,512], index: 2, kind: input, shape index: {}]   ;;  %s2869_s3 = inlined_call_operand.hbm [shape: bf16[512,128], index: 3, kind: input, shape index: {}]   ;;  %s2870_s4 = inlined_call_operand.vmem [shape: f32[1,128], index: 4, kind: input, shape index: {}]   ;;  %s2871_s5 = inlined_call_operand.hbm [shape: f32[8,128], index: 5, kind: output, shape index: {}]  }
   0x1   :  { %11 = vsyncpa [#allocation6], 0 }
   0x2   :  { %12 = vsyncpa [#allocation9], 0 }
   0x3   :  { %13 = vsyncpa [#allocation4], 0  ;;  %s31_s20 = sshll.u32 %s2867_s1, 4  ;;  %s2697_s21 = smov [#allocation5]   ;;  %s32_s20 = int_to_ptr.hbm [resolvable:$true] %s31_s20 }
   0x4   :  { %s33_s22 = sshll.u32 %s2697_s21, 4  ;;  %s18_s25 = sshll.u32 %s2866_s0, 4  ;;  %s34_s22 = int_to_ptr.vmem [resolvable:$true] %s33_s22  ;;  %s19_s25 = int_to_ptr.hbm [resolvable:$true] %s18_s25 }
   0x5   :  { %s2698_s26 = smov 256   ;;  %s2699_s27 = smov 16  }
   0x6   :  { %39 = dma.hbm_to_vmem [thread:$0]  %s32_s20, 16384, %s34_s22, [#allocation6], %s2698_s26, %s2698_s26, %s2699_s27  }
   0x7   :  { %s2700_s28 = smov [#allocation2]   ;;  %s45_s7 = sshll.u32 %s2868_s2, 4  ;;  %s46_s7 = int_to_ptr.hbm [resolvable:$true] %s45_s7 }
   0x8   :  { %s20_s29 = sshll.u32 %s2700_s28, 4  ;;  %s55_s9 = sshll.u32 %s2869_s3, 4  ;;  %s21_s29 = int_to_ptr.vmem [resolvable:$true] %s20_s29  ;;  %s56_s9 = int_to_ptr.hbm [resolvable:$true] %s55_s9 }
   0x9   :  { %26 = dma.hbm_to_vmem [thread:$0]  %s19_s25, 2048, %s21_s29, [#allocation3], %s2698_s26, %s2698_s26, %s2699_s27  }
   0xa   :  { %s2701_s10 = smov [#allocation7]   ;;  %s2702_s0 = smov [#allocation8]  }
   0xb   :  { %s47_s11 = sshll.u32 %s2701_s10, 4  ;;  %s57_s12 = sshll.u32 %s2702_s0, 4  ;;  %s48_s11 = int_to_ptr.vmem [resolvable:$true] %s47_s11  ;;  %s58_s12 = int_to_ptr.vmem [resolvable:$true] %s57_s12 }
   0xc   :  { %50 = dma.hbm_to_vmem [thread:$0]  %s46_s7, 64, %s48_s11, [#allocation6]  }
   0xd   :  { %s2703_s13 = smov 64   ;;  %s2704_s14 = smov 4  }
   0xe   :  { %63 = dma.hbm_to_vmem [thread:$0]  %s56_s9, 4096, %s58_s12, [#allocation9], %s2703_s13, %s2703_s13, %s2704_s14  }
   0xf   :  { %2689 = dma.done.wait [#allocation3], 2048  }
  0x10   :  { %2690 = vsyncadd [#allocation3], 4294965248 }
  0x11   :  { %2691 = dma.done.wait [#allocation6], 16448  }
  0x12   :  { %2692 = vsyncadd [#allocation6], 4294950848 }
  0x13   :  { %2693 = dma.done.wait [#allocation9], 4096  }
  0x14   :  { %2694 = vsyncadd [#allocation9], 4294963200  ;;  %v1871_v0 = vld [vmem:[#allocation5 + $0xe0] sm:$0xf]  ;;  %v2427_v1 = vld [vmem:[#allocation5 + $0xec] sm:$0xf0] }
  0x15   :  { %v1999_v2 = vld [vmem:[#allocation5 + $0x1e0] sm:$0xf]  ;;  %v1872_v3 = vor.u32 %v2427_v1, %v1871_v0  ;;  %v2459_v4 = vld [vmem:[#allocation5 + $0x1ec] sm:$0xf0]  ;;  %vm484_vm0 = vcmask 1041409   ;;  %vm487_vm1 = vcmask 1042434  }
  0x16   :  { %v2127_v5 = vld [vmem:[#allocation5 + $0x2e0] sm:$0xf]  ;;  %v2491_v6 = vld [vmem:[#allocation5 + $0x2ec] sm:$0xf0]  ;;  %v2000_v7 = vor.u32 %v2459_v4, %v1999_v2  ;;  %vm490_vm2 = vcmask 1043459   ;;  %vm493_vm3 = vcmask 1044484  }
  0x17   :  { %v2128_v8 = vor.u32 %v2491_v6, %v2127_v5  ;;  %v2255_v9 = vld [vmem:[#allocation5 + $0x3e0] sm:$0xf]  ;;  %v2523_v10 = vld [vmem:[#allocation5 + $0x3ec] sm:$0xf0]  ;;  %1194 = vmatpush.bf16.msra.mxu0 %v1872_v3  ;;  %vm496_vm4 = vcmask 1045509   ;;  %vm499_vm5 = vcmask 1046534  }
  0x18   :  { %v1855_v11 = vld [vmem:[#allocation5 + $0xc0] sm:$0xf]  ;;  %v2256_v12 = vor.u32 %v2523_v10, %v2255_v9  ;;  %v2423_v13 = vld [vmem:[#allocation5 + $0xcc] sm:$0xf0]  ;;  %1207 = vmatpush.bf16.msra.mxu1 %v2000_v7  ;;  %vm502_vm6 = vcmask 1047559   ;;  %s1745_s18 = sshll.u32 %s2871_s5, 4  ;;  %s1746_s18 = int_to_ptr.hbm [resolvable:$true] %s1745_s18 }
  0x19   :  { %v1983_v14 = vld [vmem:[#allocation5 + $0x1c0] sm:$0xf]  ;;  %v2455_v15 = vld [vmem:[#allocation5 + $0x1cc] sm:$0xf0]  ;;  %1220 = vmatpush.bf16.msra.mxu2 %v2128_v8  ;;  %v1856_v16 = vor.u32 %v2423_v13, %v1855_v11 }
  0x1a   :  { %v1984_v17 = vor.u32 %v2455_v15, %v1983_v14  ;;  %v2111_v18 = vld [vmem:[#allocation5 + $0x2c0] sm:$0xf]  ;;  %v2487_v19 = vld [vmem:[#allocation5 + $0x2cc] sm:$0xf0]  ;;  %1233 = vmatpush.bf16.msra.mxu3 %v2256_v12 }
  0x1b   :  { %v2239_v20 = vld [vmem:[#allocation5 + $0x3c0] sm:$0xf]  ;;  %v2112_v21 = vor.u32 %v2487_v19, %v2111_v18  ;;  %v2519_v22 = vld [vmem:[#allocation5 + $0x3cc] sm:$0xf0]  ;;  %1195 = vmatpush.bf16.msra.mxu0 %v1856_v16 }
  0x1c   :  { %v1839_v23 = vld [vmem:[#allocation5 + $0xa0] sm:$0xf]  ;;  %v2419_v24 = vld [vmem:[#allocation5 + $0xac] sm:$0xf0]  ;;  %v2240_v25 = vor.u32 %v2519_v22, %v2239_v20  ;;  %1208 = vmatpush.bf16.msra.mxu1 %v1984_v17 }
  0x1d   :  { %v1967_v26 = vld [vmem:[#allocation5 + $0x1a0] sm:$0xf]  ;;  %v2451_v27 = vld [vmem:[#allocation5 + $0x1ac] sm:$0xf0]  ;;  %v1840_v29 = vor.u32 %v2419_v24, %v1839_v23  ;;  %1221 = vmatpush.bf16.msra.mxu2 %v2112_v21 }
  0x1e   :  { %v2095_v28 = vld [vmem:[#allocation5 + $0x2a0] sm:$0xf]  ;;  %v2483_v30 = vld [vmem:[#allocation5 + $0x2ac] sm:$0xf0]  ;;  %v1968_v33 = vor.u32 %v2451_v27, %v1967_v26  ;;  %1234 = vmatpush.bf16.msra.mxu3 %v2240_v25 }
  0x1f   :  { %v2223_v31 = vld [vmem:[#allocation5 + $0x3a0] sm:$0xf]  ;;  %v2515_v32 = vld [vmem:[#allocation5 + $0x3ac] sm:$0xf0]  ;;  %v2096_v34 = vor.u32 %v2483_v30, %v2095_v28  ;;  %1196 = vmatpush.bf16.msra.mxu0 %v1840_v29  ;;  %v2425_v28 = vld [vmem:[#allocation5 + $0xe4] sm:$0xf] }
  0x20   :  { %v1823_v35 = vld [vmem:[#allocation5 + $0x80] sm:$0xf]  ;;  %v2415_v36 = vld [vmem:[#allocation5 + $0x8c] sm:$0xf0]  ;;  %v2224_v38 = vor.u32 %v2515_v32, %v2223_v31  ;;  %1209 = vmatpush.bf16.msra.mxu1 %v1968_v33  ;;  %v1873_v29 = vld [vmem:[#allocation5 + $0xf0] sm:$0xf0] }
  0x21   :  { %v1951_v37 = vld [vmem:[#allocation5 + $0x180] sm:$0xf]  ;;  %v2447_v39 = vld [vmem:[#allocation5 + $0x18c] sm:$0xf0]  ;;  %v1824_v44 = vor.u32 %v2415_v36, %v1823_v35  ;;  %1222 = vmatpush.bf16.msra.mxu2 %v2096_v34  ;;  %v2457_v30 = vld [vmem:[#allocation5 + $0x1e4] sm:$0xf] }
  0x22   :  { %v2079_v40 = vld [vmem:[#allocation5 + $0x280] sm:$0xf]  ;;  %v2479_v41 = vld [vmem:[#allocation5 + $0x28c] sm:$0xf0]  ;;  %v1952_v45 = vor.u32 %v2447_v39, %v1951_v37  ;;  %1235 = vmatpush.bf16.msra.mxu3 %v2224_v38  ;;  %v2001_v32 = vld [vmem:[#allocation5 + $0x1f0] sm:$0xf0] }
  0x23   :  { %v2207_v42 = vld [vmem:[#allocation5 + $0x380] sm:$0xf]  ;;  %v2511_v43 = vld [vmem:[#allocation5 + $0x38c] sm:$0xf0]  ;;  %v2080_v46 = vor.u32 %v2479_v41, %v2079_v40  ;;  %1197 = vmatpush.bf16.msra.mxu0 %v1824_v44  ;;  %v2489_v33 = vld [vmem:[#allocation5 + $0x2e4] sm:$0xf]  ;;  %v1876_v40 = vor.u32 %v2425_v28, %v1873_v29 }
  0x24   :  { %v1807_v47 = vld [vmem:[#allocation5 + $0x60] sm:$0xf]  ;;  %v2411_v48 = vld [vmem:[#allocation5 + $0x6c] sm:$0xf0]  ;;  %v2208_v50 = vor.u32 %v2511_v43, %v2207_v42  ;;  %1210 = vmatpush.bf16.msra.mxu1 %v1952_v45  ;;  %v2129_v34 = vld [vmem:[#allocation5 + $0x2f0] sm:$0xf0]  ;;  %v2004_v43 = vor.u32 %v2457_v30, %v2001_v32 }
  0x25   :  { %v1935_v49 = vld [vmem:[#allocation5 + $0x160] sm:$0xf]  ;;  %v2443_v51 = vld [vmem:[#allocation5 + $0x16c] sm:$0xf0]  ;;  %v1808_v56 = vor.u32 %v2411_v48, %v1807_v47  ;;  %1223 = vmatpush.bf16.msra.mxu2 %v2080_v46  ;;  %v2521_v37 = vld [vmem:[#allocation5 + $0x3e4] sm:$0xf]  ;;  %v2132_v44 = vor.u32 %v2489_v33, %v2129_v34 }
  0x26   :  { %v2063_v52 = vld [vmem:[#allocation5 + $0x260] sm:$0xf]  ;;  %v2475_v53 = vld [vmem:[#allocation5 + $0x26c] sm:$0xf0]  ;;  %v1936_v57 = vor.u32 %v2443_v51, %v1935_v49  ;;  %1236 = vmatpush.bf16.msra.mxu3 %v2208_v50  ;;  %v2257_v38 = vld [vmem:[#allocation5 + $0x3f0] sm:$0xf0] }
  0x27   :  { %v2191_v54 = vld [vmem:[#allocation5 + $0x360] sm:$0xf]  ;;  %v2507_v55 = vld [vmem:[#allocation5 + $0x36c] sm:$0xf0]  ;;  %v2064_v58 = vor.u32 %v2475_v53, %v2063_v52  ;;  %1198 = vmatpush.bf16.msra.mxu0 %v1808_v56  ;;  %v2421_v41 = vld [vmem:[#allocation5 + $0xc4] sm:$0xf]  ;;  %v2260_v48 = vor.u32 %v2521_v37, %v2257_v38 }
  0x28   :  { %v1791_v59 = vld [vmem:[#allocation5 + $0x40] sm:$0xf]  ;;  %v2407_v60 = vld [vmem:[#allocation5 + $0x4c] sm:$0xf0]  ;;  %v2192_v62 = vor.u32 %v2507_v55, %v2191_v54  ;;  %1211 = vmatpush.bf16.msra.mxu1 %v1936_v57  ;;  %v1857_v42 = vld [vmem:[#allocation5 + $0xd0] sm:$0xf0] }
  0x29   :  { %v1919_v61 = vld [vmem:[#allocation5 + $0x140] sm:$0xf]  ;;  %v2439_v63 = vld [vmem:[#allocation5 + $0x14c] sm:$0xf0]  ;;  %v1792_v4 = vor.u32 %v2407_v60, %v1791_v59  ;;  %1224 = vmatpush.bf16.msra.mxu2 %v2064_v58  ;;  %v2453_v45 = vld [vmem:[#allocation5 + $0x1c4] sm:$0xf]  ;;  %v1860_v58 = vor.u32 %v2421_v41, %v1857_v42 }
  0x2a   :  { %v2047_v0 = vld [vmem:[#allocation5 + $0x240] sm:$0xf]  ;;  %v2471_v1 = vld [vmem:[#allocation5 + $0x24c] sm:$0xf0]  ;;  %v1920_v5 = vor.u32 %v2439_v63, %v1919_v61  ;;  %1237 = vmatpush.bf16.msra.mxu3 %v2192_v62  ;;  %v1985_v46 = vld [vmem:[#allocation5 + $0x1d0] sm:$0xf0] }
  0x2b   :  { %v2175_v2 = vld [vmem:[#allocation5 + $0x340] sm:$0xf]  ;;  %v2503_v3 = vld [vmem:[#allocation5 + $0x34c] sm:$0xf0]  ;;  %v2048_v6 = vor.u32 %v2471_v1, %v2047_v0  ;;  %1199 = vmatpush.bf16.msra.mxu0 %v1792_v4  ;;  %v2485_v47 = vld [vmem:[#allocation5 + $0x2c4] sm:$0xf]  ;;  %v1988_v63 = vor.u32 %v2453_v45, %v1985_v46 }
  0x2c   :  { %v1775_v7 = vld [vmem:[#allocation5 + $0x20] sm:$0xf]  ;;  %v2403_v8 = vld [vmem:[#allocation5 + $0x2c] sm:$0xf0]  ;;  %v2176_v10 = vor.u32 %v2503_v3, %v2175_v2  ;;  %1212 = vmatpush.bf16.msra.mxu1 %v1920_v5  ;;  %v2113_v49 = vld [vmem:[#allocation5 + $0x2d0] sm:$0xf0] }
  0x2d   :  { %v1903_v9 = vld [vmem:[#allocation5 + $0x120] sm:$0xf]  ;;  %v2435_v11 = vld [vmem:[#allocation5 + $0x12c] sm:$0xf0]  ;;  %v1776_v16 = vor.u32 %v2403_v8, %v1775_v7  ;;  %1225 = vmatpush.bf16.msra.mxu2 %v2048_v6  ;;  %v2517_v50 = vld [vmem:[#allocation5 + $0x3c4] sm:$0xf]  ;;  %v2116_v0 = vor.u32 %v2485_v47, %v2113_v49 }
  0x2e   :  { %v2031_v12 = vld [vmem:[#allocation5 + $0x220] sm:$0xf]  ;;  %v2467_v13 = vld [vmem:[#allocation5 + $0x22c] sm:$0xf0]  ;;  %v1904_v19 = vor.u32 %v2435_v11, %v1903_v9  ;;  %1238 = vmatpush.bf16.msra.mxu3 %v2176_v10  ;;  %v2241_v51 = vld [vmem:[#allocation5 + $0x3d0] sm:$0xf0] }
  0x2f   :  { %v2159_v14 = vld [vmem:[#allocation5 + $0x320] sm:$0xf]  ;;  %v2499_v15 = vld [vmem:[#allocation5 + $0x32c] sm:$0xf0]  ;;  %v2032_v20 = vor.u32 %v2467_v13, %v2031_v12  ;;  %1200 = vmatpush.bf16.msra.mxu0 %v1776_v16  ;;  %v2417_v52 = vld [vmem:[#allocation5 + $0xa4] sm:$0xf]  ;;  %v2244_v5 = vor.u32 %v2517_v50, %v2241_v51 }
  0x30   :  { %v1759_v17 = vld [vmem:[#allocation5] sm:$0xf]  ;;  %v2399_v18 = vld [vmem:[#allocation5 + $0xc] sm:$0xf0]  ;;  %v2160_v24 = vor.u32 %v2499_v15, %v2159_v14  ;;  %1213 = vmatpush.bf16.msra.mxu1 %v1904_v19  ;;  %v1841_v53 = vld [vmem:[#allocation5 + $0xb0] sm:$0xf0] }
  0x31   :  { %v1887_v21 = vld [vmem:[#allocation5 + $0x100] sm:$0xf]  ;;  %v2431_v22 = vld [vmem:[#allocation5 + $0x10c] sm:$0xf0]  ;;  %v1760_v31 = vor.u32 %v2399_v18, %v1759_v17  ;;  %1226 = vmatpush.bf16.msra.mxu2 %v2032_v20  ;;  %v2748_v54 = vld [vmem:[#allocation5 + $0x1a4] sm:$0xf]  ;;  %v1844_v14 = vor.u32 %v2417_v52, %v1841_v53 }
  0x32   :  { %v2015_v23 = vld [vmem:[#allocation5 + $0x200] sm:$0xf]  ;;  %v2463_v25 = vld [vmem:[#allocation5 + $0x20c] sm:$0xf0]  ;;  %v1888_v35 = vor.u32 %v2431_v22, %v1887_v21  ;;  %1239 = vmatpush.bf16.msra.mxu3 %v2160_v24  ;;  %v2750_v55 = vld [vmem:[#allocation5 + $0x1b0] sm:$0xf0] }
  0x33   :  { %v2143_v26 = vld [vmem:[#allocation5 + $0x300] sm:$0xf]  ;;  %v2495_v27 = vld [vmem:[#allocation5 + $0x30c] sm:$0xf0]  ;;  %v2016_v36 = vor.u32 %v2463_v25, %v2015_v23  ;;  %1201 = vmatpush.bf16.msra.mxu0 %v1760_v31  ;;  %v2481_v59 = vld [vmem:[#allocation5 + $0x2a4] sm:$0xf]  ;;  %v1972_v15 = vor.u32 %v2748_v54, %v2750_v55 }
  0x34   :  { %v2144_v39 = vor.u32 %v2495_v27, %v2143_v26  ;;  %1214 = vmatpush.bf16.msra.mxu1 %v1888_v35  ;;  %v82_v56 = vld [vmem:[#allocation2] ss:$4 sm:$0xf]  ;;  %v84_v57 = vld [vmem:[#allocation2 + $0x10] ss:$4 sm:$0xf] }
  0x35   :  { %1227 = vmatpush.bf16.msra.mxu2 %v2016_v36  ;;  %v2097_v60 = vld [vmem:[#allocation5 + $0x2b0] sm:$0xf0]  ;;  %v86_v61 = vld [vmem:[#allocation2 + $0x20] ss:$4 sm:$0xf] }
  0x36   :  { %1240 = vmatpush.bf16.msra.mxu3 %v2144_v39  ;;  %v88_v62 = vld [vmem:[#allocation2 + $0x30] ss:$4 sm:$0xf]  ;;  %v2513_v1 = vld [vmem:[#allocation5 + $0x3a4] sm:$0xf]  ;;  %v2100_v22 = vor.u32 %v2481_v59, %v2097_v60 }
  0x37   :  { %1246 = vmatpush.bf16.msrb.mxu0 %v1876_v40  ;;  %v2225_v2 = vld [vmem:[#allocation5 + $0x3b0] sm:$0xf0]  ;;  %v90_v3 = vld [vmem:[#allocation2 + $0x40] ss:$4 sm:$0xf] }
  0x38   :  { %1259 = vmatpush.bf16.msrb.mxu1 %v2004_v43  ;;  %v92_v4 = vld [vmem:[#allocation2 + $0x50] ss:$4 sm:$0xf]  ;;  %v94_v6 = vld [vmem:[#allocation2 + $0x60] ss:$4 sm:$0xf]  ;;  %v2228_v29 = vor.u32 %v2513_v1, %v2225_v2 }
  0x39   :  { %1272 = vmatpush.bf16.msrb.mxu2 %v2132_v44  ;;  %v96_v7 = vld [vmem:[#allocation2 + $0x70] ss:$4 sm:$0xf]  ;;  %v2413_v8 = vld [vmem:[#allocation5 + $0x84] sm:$0xf] }
  0x3a   :  { %1285 = vmatpush.bf16.msrb.mxu3 %v2260_v48  ;;  %v1825_v9 = vld [vmem:[#allocation5 + $0x90] sm:$0xf0]  ;;  %v2445_v10 = vld [vmem:[#allocation5 + $0x184] sm:$0xf] }
  0x3b   :  { %v1953_v11 = vld [vmem:[#allocation5 + $0x190] sm:$0xf0]  ;;  %v98_v12 = vld [vmem:[#allocation2 + $0x1] ss:$4 sm:$0xf]  ;;  %1247 = vmatpush.bf16.msrb.mxu0 %v1860_v58  ;;  %v1828_v38 = vor.u32 %v2413_v8, %v1825_v9 }
  0x3c   :  { %v100_v13 = vld [vmem:[#allocation2 + $0x11] ss:$4 sm:$0xf]  ;;  %v2477_v16 = vld [vmem:[#allocation5 + $0x284] sm:$0xf]  ;;  %v113_v20 = vadd.f32 %v98_v12, %v82_v56  ;;  %1260 = vmatpush.bf16.msrb.mxu1 %v1988_v63  ;;  %v1956_v39 = vor.u32 %v2445_v10, %v1953_v11 }
  0x3d   :  { %v2081_v17 = vld [vmem:[#allocation5 + $0x290] sm:$0xf0]  ;;  %v102_v18 = vld [vmem:[#allocation2 + $0x21] ss:$4 sm:$0xf]  ;;  %v114_v21 = vadd.f32 %v100_v13, %v84_v57  ;;  %1273 = vmatpush.bf16.msrb.mxu2 %v2116_v0 }
  0x3e   :  { %v104_v19 = vld [vmem:[#allocation2 + $0x31] ss:$4 sm:$0xf]  ;;  %v2509_v23 = vld [vmem:[#allocation5 + $0x384] sm:$0xf]  ;;  %v115_v27 = vadd.f32 %v102_v18, %v86_v61  ;;  %1286 = vmatpush.bf16.msrb.mxu3 %v2244_v5  ;;  %v2084_v44 = vor.u32 %v2477_v16, %v2081_v17 }
  0x3f   :  { %v2209_v24 = vld [vmem:[#allocation5 + $0x390] sm:$0xf0]  ;;  %v106_v25 = vld [vmem:[#allocation2 + $0x41] ss:$4 sm:$0xf]  ;;  %v116_v28 = vadd.f32 %v104_v19, %v88_v62  ;;  %1248 = vmatpush.bf16.msrb.mxu0 %v1844_v14 }
  0x40   :  { %v108_v26 = vld [vmem:[#allocation2 + $0x51] ss:$4 sm:$0xf]  ;;  %v110_v30 = vld [vmem:[#allocation2 + $0x61] ss:$4 sm:$0xf]  ;;  %v117_v32 = vadd.f32 %v106_v25, %v90_v3  ;;  %1261 = vmatpush.bf16.msrb.mxu1 %v1972_v15  ;;  %v2212_v49 = vor.u32 %v2509_v23, %v2209_v24 }
  0x41   :  { %v112_v31 = vld [vmem:[#allocation2 + $0x71] ss:$4 sm:$0xf]  ;;  %v118_v33 = vadd.f32 %v108_v26, %v92_v4  ;;  %v119_v34 = vadd.f32 %v110_v30, %v94_v6  ;;  %v122_v36 = vld [vmem:[#allocation2 + $0x2] ss:$4 sm:$0xf]  ;;  %1274 = vmatpush.bf16.msrb.mxu2 %v2100_v22 }
  0x42   :  { %v120_v35 = vadd.f32 %v112_v31, %v96_v7  ;;  %v124_v37 = vld [vmem:[#allocation2 + $0x12] ss:$4 sm:$0xf]  ;;  %v126_v40 = vld [vmem:[#allocation2 + $0x22] ss:$4 sm:$0xf]  ;;  %v137_v42 = vadd.f32 %v122_v36, %v113_v20  ;;  %1287 = vmatpush.bf16.msrb.mxu3 %v2228_v29 }
  0x43   :  { %v128_v41 = vld [vmem:[#allocation2 + $0x32] ss:$4 sm:$0xf]  ;;  %v138_v43 = vadd.f32 %v124_v37, %v114_v21  ;;  %v130_v45 = vld [vmem:[#allocation2 + $0x42] ss:$4 sm:$0xf]  ;;  %v139_v47 = vadd.f32 %v126_v40, %v115_v27  ;;  %1249 = vmatpush.bf16.msrb.mxu0 %v1828_v38 }
  0x44   :  { %v132_v46 = vld [vmem:[#allocation2 + $0x52] ss:$4 sm:$0xf]  ;;  %v140_v48 = vadd.f32 %v128_v41, %v116_v28  ;;  %v134_v50 = vld [vmem:[#allocation2 + $0x62] ss:$4 sm:$0xf]  ;;  %v141_v52 = vadd.f32 %v130_v45, %v117_v32  ;;  %1262 = vmatpush.bf16.msrb.mxu1 %v1956_v39 }
  0x45   :  { %v136_v51 = vld [vmem:[#allocation2 + $0x72] ss:$4 sm:$0xf]  ;;  %v142_v53 = vadd.f32 %v132_v46, %v118_v33  ;;  %v143_v54 = vadd.f32 %v134_v50, %v119_v34  ;;  %v146_v56 = vld [vmem:[#allocation2 + $0x3] ss:$4 sm:$0xf]  ;;  %1275 = vmatpush.bf16.msrb.mxu2 %v2084_v44 }
  0x46   :  { %v144_v55 = vadd.f32 %v136_v51, %v120_v35  ;;  %v148_v57 = vld [vmem:[#allocation2 + $0x13] ss:$4 sm:$0xf]  ;;  %v150_v58 = vld [vmem:[#allocation2 + $0x23] ss:$4 sm:$0xf]  ;;  %v161_v60 = vadd.f32 %v146_v56, %v137_v42  ;;  %1288 = vmatpush.bf16.msrb.mxu3 %v2212_v49 }
  0x47   :  { %v152_v59 = vld [vmem:[#allocation2 + $0x33] ss:$4 sm:$0xf]  ;;  %v162_v61 = vadd.f32 %v148_v57, %v138_v43  ;;  %v154_v62 = vld [vmem:[#allocation2 + $0x43] ss:$4 sm:$0xf]  ;;  %v163_v0 = vadd.f32 %v150_v58, %v139_v47 }
  0x48   :  { %v156_v63 = vld [vmem:[#allocation2 + $0x53] ss:$4 sm:$0xf]  ;;  %v164_v1 = vadd.f32 %v152_v59, %v140_v48  ;;  %v158_v2 = vld [vmem:[#allocation2 + $0x63] ss:$4 sm:$0xf]  ;;  %v165_v4 = vadd.f32 %v154_v62, %v141_v52 }
  0x49   :  { %v160_v3 = vld [vmem:[#allocation2 + $0x73] ss:$4 sm:$0xf]  ;;  %v166_v5 = vadd.f32 %v156_v63, %v142_v53  ;;  %v167_v6 = vadd.f32 %v158_v2, %v143_v54  ;;  %v2754_v8 = vmul.f32 0.25, %v161_v60  ;;  %v2756_v9 = vmul.f32 0.25, %v162_v61 }
  0x4a   :  { %v168_v7 = vadd.f32 %v160_v3, %v144_v55  ;;  %v2758_v10 = vmul.f32 0.25, %v163_v0  ;;  %v2760_v11 = vmul.f32 0.25, %v164_v1  ;;  %v2762_v12 = vmul.f32 0.25, %v165_v4  ;;  %v2409_v38 = vld [vmem:[#allocation5 + $0x64] sm:$0xf] }
  0x4b   :  { %v2764_v13 = vmul.f32 0.25, %v166_v5  ;;  %v2766_v14 = vmul.f32 0.25, %v167_v6  ;;  %v187_v16 = vperm.slane %v2754_v8, 2  ;;  %v191_v17 = vperm.slane %v2756_v9, 2  ;;  %v1809_v39 = vld [vmem:[#allocation5 + $0x70] sm:$0xf0] }
  0x4c   :  { %v2768_v15 = vmul.f32 0.25, %v168_v7  ;;  %v195_v18 = vperm.slane %v2758_v10, 2  ;;  %v199_v19 = vperm.slane %v2760_v11, 2  ;;  %v203_v20 = vperm.slane %v2762_v12, 2  ;;  %v2441_v40 = vld [vmem:[#allocation5 + $0x164] sm:$0xf] }
  0x4d   :  { %v207_v21 = vperm.slane %v2764_v13, 2  ;;  %v211_v22 = vperm.slane %v2766_v14, 2  ;;  %v251_v24 = vpack.c.bf16 %v187_v16, %v187_v16  ;;  %v255_v25 = vpack.c.bf16 %v191_v17, %v191_v17  ;;  %v1937_v41 = vld [vmem:[#allocation5 + $0x170] sm:$0xf0]  ;;  %v2473_v44 = vld [vmem:[#allocation5 + $0x264] sm:$0xf] }
  0x4e   :  { %v215_v23 = vperm.slane %v2768_v15, 2  ;;  %v259_v26 = vpack.c.bf16 %v195_v18, %v195_v18  ;;  %v263_v27 = vpack.c.bf16 %v199_v19, %v199_v19  ;;  %v267_v28 = vpack.c.bf16 %v203_v20, %v203_v20  ;;  %v2065_v45 = vld [vmem:[#allocation5 + $0x270] sm:$0xf0]  ;;  %v2505_v46 = vld [vmem:[#allocation5 + $0x364] sm:$0xf] }
  0x4f   :  { %v271_v29 = vpack.c.bf16 %v207_v21, %v207_v21  ;;  %v275_v30 = vpack.c.bf16 %v211_v22, %v211_v22  ;;  %v453_v32 = vunpack.c.l.b16 %v251_v24  ;;  %v457_v33 = vunpack.c.l.b16 %v255_v25  ;;  %v2193_v50 = vld [vmem:[#allocation5 + $0x370] sm:$0xf0] }
  0x50   :  { %v279_v31 = vpack.c.bf16 %v215_v23, %v215_v23  ;;  %v461_v34 = vunpack.c.l.b16 %v259_v26  ;;  %v465_v35 = vunpack.c.l.b16 %v263_v27  ;;  %v469_v36 = vunpack.c.l.b16 %v267_v28 }
  0x51   :  { %v473_v37 = vunpack.c.l.b16 %v271_v29  ;;  %v477_v42 = vunpack.c.l.b16 %v275_v30  ;;  %v518_v47 = vrot.slane %v457_v33, 7  ;;  %v1812_v56 = vor.u32 %v2409_v38, %v1809_v39 }
  0x52   :  { %v481_v43 = vunpack.c.l.b16 %v279_v31  ;;  %v520_v48 = vrot.slane %v461_v34, 6  ;;  %v522_v49 = vrot.slane %v465_v35, 5  ;;  %v524_v51 = vrot.slane %v469_v36, 4 }
  0x53   :  { %v526_v52 = vrot.slane %v473_v37, 3  ;;  %v528_v53 = vrot.slane %v477_v42, 2  ;;  %v519_v55 = vsel %vm484_vm0, %v518_v47, %v453_v32  ;;  %v1940_v57 = vor.u32 %v2441_v40, %v1937_v41  ;;  %1250 = vmatpush.bf16.msrb.mxu0 %v1812_v56 }
  0x54   :  { %v530_v54 = vrot.slane %v481_v43, 1  ;;  %v2068_v58 = vor.u32 %v2473_v44, %v2065_v45  ;;  %v521_v59 = vsel %vm487_vm1, %v520_v48, %v519_v55  ;;  %v2196_v60 = vor.u32 %v2505_v46, %v2193_v50 }
  0x55   :  { %v185_v61 = vperm.slane %v2754_v8, 0  ;;  %v189_v62 = vperm.slane %v2756_v9, 0  ;;  %v523_v63 = vsel %vm490_vm2, %v522_v49, %v521_v59  ;;  %1263 = vmatpush.bf16.msrb.mxu1 %v1940_v57  ;;  %v193_v0 = vperm.slane %v2758_v10, 0 }
  0x56   :  { %v197_v1 = vperm.slane %v2760_v11, 0  ;;  %v201_v2 = vperm.slane %v2762_v12, 0  ;;  %v525_v3 = vsel %vm493_vm3, %v524_v51, %v523_v63  ;;  %1276 = vmatpush.bf16.msrb.mxu2 %v2068_v58  ;;  %1289 = vmatpush.bf16.msrb.mxu3 %v2196_v60  ;;  %v205_v4 = vperm.slane %v2764_v13, 0 }
  0x57   :  { %v209_v5 = vperm.slane %v2766_v14, 0  ;;  %v213_v6 = vperm.slane %v2768_v15, 0  ;;  %v527_v7 = vsel %vm496_vm4, %v526_v52, %v525_v3  ;;  %v249_v16 = vpack.c.bf16 %v185_v61, %v185_v61 }
  0x58   :  { %v253_v17 = vpack.c.bf16 %v189_v62, %v189_v62  ;;  %v257_v18 = vpack.c.bf16 %v193_v0, %v193_v0  ;;  %v529_v19 = vsel %vm499_vm5, %v528_v53, %v527_v7  ;;  %v261_v20 = vpack.c.bf16 %v197_v1, %v197_v1 }
  0x59   :  { %v265_v21 = vpack.c.bf16 %v201_v2, %v201_v2  ;;  %v269_v22 = vpack.c.bf16 %v205_v4, %v205_v4  ;;  %v531_v23 = vsel %vm502_vm6, %v530_v54, %v529_v19  ;;  %v273_v24 = vpack.c.bf16 %v209_v5, %v209_v5 }
  0x5a   :  { %v277_v25 = vpack.c.bf16 %v213_v6, %v213_v6  ;;  %v451_v26 = vunpack.c.l.b16 %v249_v16  ;;  %v2793_v27 = vpack.c.b16 %v531_v23, %v531_v23  ;;  %v455_v28 = vunpack.c.l.b16 %v253_v17 }
  0x5b   :  { %v459_v29 = vunpack.c.l.b16 %v257_v18  ;;  %v463_v30 = vunpack.c.l.b16 %v261_v20  ;;  %v467_v31 = vunpack.c.l.b16 %v265_v21  ;;  %v471_v32 = vunpack.c.l.b16 %v269_v22 }
  0x5c   :  { %v475_v33 = vunpack.c.l.b16 %v273_v24  ;;  %v479_v34 = vunpack.c.l.b16 %v277_v25  ;;  %1228 = vmatmul.bf16.vlgmr.msra.gmra.mxu2 %v2793_v27  ;;  %v483_v35 = vrot.slane %v455_v28, 7  ;;  %v188_v38 = vperm.slane %v2754_v8, 3 }
  0x5d   :  { %v486_v36 = vrot.slane %v459_v29, 6  ;;  %v489_v37 = vrot.slane %v463_v30, 5  ;;  %v492_v39 = vrot.slane %v467_v31, 4  ;;  %v495_v40 = vrot.slane %v471_v32, 3 }
  0x5e   :  { %v498_v41 = vrot.slane %v475_v33, 2  ;;  %v501_v42 = vrot.slane %v479_v34, 1  ;;  %v485_v43 = vsel %vm484_vm0, %v483_v35, %v451_v26  ;;  %v192_v44 = vperm.slane %v2756_v9, 3 }
  0x5f   :  { %v196_v45 = vperm.slane %v2758_v10, 3  ;;  %v200_v46 = vperm.slane %v2760_v11, 3  ;;  %v488_v47 = vsel %vm487_vm1, %v486_v36, %v485_v43  ;;  %v204_v48 = vperm.slane %v2762_v12, 3 }
  0x60   :  { %v208_v49 = vperm.slane %v2764_v13, 3  ;;  %v212_v50 = vperm.slane %v2766_v14, 3  ;;  %v491_v51 = vsel %vm490_vm2, %v489_v37, %v488_v47  ;;  %v216_v52 = vperm.slane %v2768_v15, 3 }
  0x61   :  { %v252_v53 = vpack.c.bf16 %v188_v38, %v188_v38  ;;  %v256_v54 = vpack.c.bf16 %v192_v44, %v192_v44  ;;  %v494_v55 = vsel %vm493_vm3, %v492_v39, %v491_v51  ;;  %v260_v56 = vpack.c.bf16 %v196_v45, %v196_v45  ;;  %v2437_v44 = vld [vmem:[#allocation5 + $0x144] sm:$0xf] }
  0x62   :  { %v264_v57 = vpack.c.bf16 %v200_v46, %v200_v46  ;;  %v268_v58 = vpack.c.bf16 %v204_v48, %v204_v48  ;;  %v497_v59 = vsel %vm496_vm4, %v495_v40, %v494_v55  ;;  %v272_v60 = vpack.c.bf16 %v208_v49, %v208_v49  ;;  %v2469_v48 = vld [vmem:[#allocation5 + $0x244] sm:$0xf]  ;;  %v2049_v49 = vld [vmem:[#allocation5 + $0x250] sm:$0xf0] }
  0x63   :  { %v276_v61 = vpack.c.bf16 %v212_v50, %v212_v50  ;;  %v280_v62 = vpack.c.bf16 %v216_v52, %v216_v52  ;;  %v500_v63 = vsel %vm499_vm5, %v498_v41, %v497_v59  ;;  %v454_v0 = vunpack.c.l.b16 %v252_v53  ;;  %v2501_v50 = vld [vmem:[#allocation5 + $0x344] sm:$0xf]  ;;  %v2177_v55 = vld [vmem:[#allocation5 + $0x350] sm:$0xf0] }
  0x64   :  { %v458_v1 = vunpack.c.l.b16 %v256_v54  ;;  %v462_v2 = vunpack.c.l.b16 %v260_v56  ;;  %v503_v3 = vsel %vm502_vm6, %v501_v42, %v500_v63  ;;  %v466_v4 = vunpack.c.l.b16 %v264_v57  ;;  %v2401_v56 = vld [vmem:[#allocation5 + $0x24] sm:$0xf]  ;;  %v1777_v57 = vld [vmem:[#allocation5 + $0x30] sm:$0xf0] }
  0x65   :  { %v470_v5 = vunpack.c.l.b16 %v268_v58  ;;  %v474_v6 = vunpack.c.l.b16 %v272_v60  ;;  %v2811_v7 = vpack.c.b16 %v503_v3, %v503_v3  ;;  %v478_v16 = vunpack.c.l.b16 %v276_v61  ;;  %v1905_v63 = vld [vmem:[#allocation5 + $0x130] sm:$0xf0]  ;;  %v2465_v3 = vld [vmem:[#allocation5 + $0x224] sm:$0xf] }
  0x66   :  { %v482_v17 = vunpack.c.l.b16 %v280_v62  ;;  %v532_v18 = vrot.slane %v458_v1, 7  ;;  %v534_v19 = vrot.slane %v462_v2, 6  ;;  %v536_v20 = vrot.slane %v466_v4, 5  ;;  %v2433_v62 = vld [vmem:[#allocation5 + $0x124] sm:$0xf] }
  0x67   :  { %v538_v21 = vrot.slane %v470_v5, 4  ;;  %v540_v22 = vrot.slane %v474_v6, 3  ;;  %1202 = vmatmul.bf16.vlgmr.msra.gmra.mxu0 %v2811_v7  ;;  %v542_v24 = vrot.slane %v478_v16, 2  ;;  %v186_v26 = vperm.slane %v2754_v8, 1  ;;  %v2033_v4 = vld [vmem:[#allocation5 + $0x230] sm:$0xf0] }
  0x68   :  { %v533_v23 = vsel %vm484_vm0, %v532_v18, %v454_v0  ;;  %v544_v25 = vrot.slane %v482_v17, 1  ;;  %v190_v29 = vperm.slane %v2756_v9, 1  ;;  %v194_v30 = vperm.slane %v2758_v10, 1  ;;  %v2497_v18 = vld [vmem:[#allocation5 + $0x324] sm:$0xf] }
  0x69   :  { %v535_v28 = vsel %vm487_vm1, %v534_v19, %v533_v23  ;;  %v198_v31 = vperm.slane %v2760_v11, 1  ;;  %v202_v33 = vperm.slane %v2762_v12, 1  ;;  %v206_v34 = vperm.slane %v2764_v13, 1  ;;  %v2405_v11 = vld [vmem:[#allocation5 + $0x44] sm:$0xf] }
  0x6a   :  { %v537_v32 = vsel %vm490_vm2, %v536_v20, %v535_v28  ;;  %v210_v35 = vperm.slane %v2766_v14, 1  ;;  %v214_v8 = vperm.slane %v2768_v15, 1  ;;  %v250_v37 = vpack.c.bf16 %v186_v26, %v186_v26  ;;  %v1793_v13 = vld [vmem:[#allocation5 + $0x50] sm:$0xf0]  ;;  %v2429_v26 = vld [vmem:[#allocation5 + $0x104] sm:$0xf] }
  0x6b   :  { %v539_v36 = vsel %vm493_vm3, %v538_v21, %v537_v32  ;;  %v254_v38 = vpack.c.bf16 %v190_v29, %v190_v29  ;;  %v258_v39 = vpack.c.bf16 %v194_v30, %v194_v30  ;;  %v262_v10 = vpack.c.bf16 %v198_v31, %v198_v31  ;;  %v1921_v14 = vld [vmem:[#allocation5 + $0x150] sm:$0xf0]  ;;  %v2461_v32 = vld [vmem:[#allocation5 + $0x204] sm:$0xf] }
  0x6c   :  { %v541_v9 = vsel %vm496_vm4, %v540_v22, %v539_v36  ;;  %v266_v40 = vpack.c.bf16 %v202_v33, %v202_v33  ;;  %v270_v42 = vpack.c.bf16 %v206_v34, %v206_v34  ;;  %v274_v12 = vpack.c.bf16 %v210_v35, %v210_v35  ;;  %v2161_v19 = vld [vmem:[#allocation5 + $0x330] sm:$0xf0] }
  0x6d   :  { %v543_v41 = vsel %vm499_vm5, %v542_v24, %v541_v9  ;;  %v278_v43 = vpack.c.bf16 %v214_v8, %v214_v8  ;;  %v452_v46 = vunpack.c.l.b16 %v250_v37  ;;  %v456_v15 = vunpack.c.l.b16 %v254_v38  ;;  %v2397_v24 = vld [vmem:[#allocation5 + $0x4] sm:$0xf]  ;;  %v1889_v31 = vld [vmem:[#allocation5 + $0x110] sm:$0xf0]  ;;  %v1879_v8 = vld [vmem:[#allocation5 + $0xe8] sm:$0xf] }
  0x6e   :  { %v545_v45 = vsel %vm502_vm6, %v544_v25, %v543_v41  ;;  %v460_v47 = vunpack.c.l.b16 %v258_v39  ;;  %v464_v52 = vunpack.c.l.b16 %v262_v10  ;;  %v468_v53 = vunpack.c.l.b16 %v266_v40  ;;  %v1761_v25 = vld [vmem:[#allocation5 + $0x10] sm:$0xf0]  ;;  %v2428_v37 = vld [vmem:[#allocation5 + $0xf4] sm:$0xf0]  ;;  %v2493_v9 = vld [vmem:[#allocation5 + $0x304] sm:$0xf] }
  0x6f   :  { %v2829_v51 = vpack.c.b16 %v545_v45, %v545_v45  ;;  %v472_v54 = vunpack.c.l.b16 %v270_v42  ;;  %v476_v58 = vunpack.c.l.b16 %v274_v12  ;;  %v480_v59 = vunpack.c.l.b16 %v278_v43  ;;  %v2017_v36 = vld [vmem:[#allocation5 + $0x210] sm:$0xf0]  ;;  %v2007_v10 = vld [vmem:[#allocation5 + $0x1e8] sm:$0xf]  ;;  %v2460_v41 = vld [vmem:[#allocation5 + $0x1f4] sm:$0xf0] }
  0x70   :  { %v504_v60 = vrot.slane %v456_v15, 7  ;;  %v506_v61 = vrot.slane %v460_v47, 6  ;;  %v508_v0 = vrot.slane %v464_v52, 5  ;;  %v510_v1 = vrot.slane %v468_v53, 4  ;;  %v2145_v39 = vld [vmem:[#allocation5 + $0x310] sm:$0xf0] }
  0x71   :  { %1241 = vmatmul.bf16.vlgmr.msra.gmra.mxu3 %v2829_v51  ;;  %v1796_v2 = vor.u32 %v2405_v11, %v1793_v13  ;;  %v512_v6 = vrot.slane %v472_v54, 3  ;;  %v514_v16 = vrot.slane %v476_v58, 2  ;;  %v1924_v17 = vor.u32 %v2437_v44, %v1921_v14  ;;  %v2135_v42 = vld [vmem:[#allocation5 + $0x2e8] sm:$0xf]  ;;  %v2492_v12 = vld [vmem:[#allocation5 + $0x2f4] sm:$0xf0] }
  0x72   :  { %v505_v5 = vsel %vm484_vm0, %v504_v60, %v452_v46  ;;  %v2052_v21 = vor.u32 %v2469_v48, %v2049_v49  ;;  %v2180_v22 = vor.u32 %v2501_v50, %v2177_v55  ;;  %v1780_v23 = vor.u32 %v2401_v56, %v1777_v57  ;;  %v2263_v14 = vld [vmem:[#allocation5 + $0x3e8] sm:$0xf]  ;;  %v2524_v45 = vld [vmem:[#allocation5 + $0x3f4] sm:$0xf0] }
  0x73   :  { %v507_v20 = vsel %vm487_vm1, %v506_v61, %v505_v5  ;;  %1251 = vmatpush.bf16.msrb.mxu0 %v1796_v2  ;;  %v516_v29 = vrot.slane %v480_v59, 1  ;;  %1264 = vmatpush.bf16.msrb.mxu1 %v1924_v17  ;;  %v1908_v30 = vor.u32 %v2433_v62, %v1905_v63  ;;  %v2036_v34 = vor.u32 %v2465_v3, %v2033_v4  ;;  %v1863_v48 = vld [vmem:[#allocation5 + $0xc8] sm:$0xf]  ;;  %v2424_v49 = vld [vmem:[#allocation5 + $0xd4] sm:$0xf0] }
  0x74   :  { %v509_v28 = vsel %vm490_vm2, %v508_v0, %v507_v20  ;;  %1277 = vmatpush.bf16.msrb.mxu2 %v2052_v21  ;;  %1290 = vmatpush.bf16.msrb.mxu3 %v2180_v22  ;;  %v2164_v35 = vor.u32 %v2497_v18, %v2161_v19  ;;  %v1764_v11 = vor.u32 %v2397_v24, %v1761_v25  ;;  %v1991_v53 = vld [vmem:[#allocation5 + $0x1c8] sm:$0xf]  ;;  %v2456_v55 = vld [vmem:[#allocation5 + $0x1d4] sm:$0xf0] }
  0x75   :  { %v511_v33 = vsel %vm493_vm3, %v510_v1, %v509_v28  ;;  %v1892_v13 = vor.u32 %v2429_v26, %v1889_v31  ;;  %v1880_v44 = vor.u32 %v2428_v37, %v1879_v8  ;;  %v2020_v15 = vor.u32 %v2461_v32, %v2017_v36  ;;  %v2119_v56 = vld [vmem:[#allocation5 + $0x2c8] sm:$0xf]  ;;  %v2488_v57 = vld [vmem:[#allocation5 + $0x2d4] sm:$0xf0] }
  0x76   :  { %v513_v38 = vsel %vm496_vm4, %v512_v6, %v511_v33  ;;  %v2148_v47 = vor.u32 %v2493_v9, %v2145_v39  ;;  %v2008_v50 = vor.u32 %v2460_v41, %v2007_v10  ;;  %v2136_v52 = vor.u32 %v2492_v12, %v2135_v42  ;;  %v2247_v59 = vld [vmem:[#allocation5 + $0x3c8] sm:$0xf]  ;;  %v2520_v60 = vld [vmem:[#allocation5 + $0x3d4] sm:$0xf0] }
  0x77   :  { %v515_v40 = vsel %vm499_vm5, %v514_v16, %v513_v38  ;;  %1252 = vmatpush.bf16.msrb.mxu0 %v1780_v23  ;;  %1265 = vmatpush.bf16.msrb.mxu1 %v1908_v30  ;;  %v2264_v54 = vor.u32 %v2524_v45, %v2263_v14  ;;  %v1864_v58 = vor.u32 %v2424_v49, %v1863_v48  ;;  %v1847_v61 = vld [vmem:[#allocation5 + $0xa8] sm:$0xf]  ;;  %v2420_v62 = vld [vmem:[#allocation5 + $0xb4] sm:$0xf0] }
  0x78   :  { %v517_v43 = vsel %vm502_vm6, %v516_v29, %v515_v40  ;;  %1278 = vmatpush.bf16.msrb.mxu2 %v2036_v34  ;;  %1291 = vmatpush.bf16.msrb.mxu3 %v2164_v35  ;;  %v1992_v63 = vor.u32 %v2456_v55, %v1991_v53  ;;  %v2120_v0 = vor.u32 %v2488_v57, %v2119_v56  ;;  %v1975_v1 = vld [vmem:[#allocation5 + $0x1a8] sm:$0xf]  ;;  %v2452_v3 = vld [vmem:[#allocation5 + $0x1b4] sm:$0xf0] }
  0x79   :  { %v2839_v46 = vpack.c.b16 %v517_v43, %v517_v43  ;;  %v2248_v2 = vor.u32 %v2520_v60, %v2247_v59  ;;  %v2103_v4 = vld [vmem:[#allocation5 + $0x2a8] sm:$0xf]  ;;  %v2484_v5 = vld [vmem:[#allocation5 + $0x2b4] sm:$0xf0]  ;;  %v1848_v6 = vor.u32 %v2420_v62, %v1847_v61  ;;  %v1976_v20 = vor.u32 %v2452_v3, %v1975_v1 }
  0x7a   :  { %v2231_v16 = vld [vmem:[#allocation5 + $0x3a8] sm:$0xf]  ;;  %v2516_v17 = vld [vmem:[#allocation5 + $0x3b4] sm:$0xf0]  ;;  %v2104_v21 = vor.u32 %v2484_v5, %v2103_v4  ;;  %v2426_v4 = vld [vmem:[#allocation5 + $0xec] sm:$0xf] }
  0x7b   :  { %1215 = vmatmul.bf16.vlgmr.msra.gmra.mxu1 %v2839_v46  ;;  %1253 = vmatpush.bf16.msrb.mxu0 %v1764_v11  ;;  %v1831_v18 = vld [vmem:[#allocation5 + $0x88] sm:$0xf]  ;;  %v2416_v19 = vld [vmem:[#allocation5 + $0x94] sm:$0xf0]  ;;  %v2232_v23 = vor.u32 %v2516_v17, %v2231_v16  ;;  %v1881_v5 = vld [vmem:[#allocation5 + $0xf8] sm:$0xf0] }
  0x7c   :  { %1266 = vmatpush.bf16.msrb.mxu1 %v1892_v13  ;;  %1279 = vmatpush.bf16.msrb.mxu2 %v2020_v15  ;;  %v1959_v22 = vld [vmem:[#allocation5 + $0x188] sm:$0xf]  ;;  %v2448_v24 = vld [vmem:[#allocation5 + $0x194] sm:$0xf0]  ;;  %v1832_v28 = vor.u32 %v2416_v19, %v1831_v18 }
  0x7d   :  { %1292 = vmatpush.bf16.msrb.mxu3 %v2148_v47  ;;  %v2087_v25 = vld [vmem:[#allocation5 + $0x288] sm:$0xf]  ;;  %v2480_v26 = vld [vmem:[#allocation5 + $0x294] sm:$0xf0]  ;;  %v1960_v33 = vor.u32 %v2448_v24, %v1959_v22  ;;  %v2490_v22 = vld [vmem:[#allocation5 + $0x2ec] sm:$0xf] }
  0x7e   :  { %1254 = vmatmul.bf16.vlgmr.msrb.gmra.mxu0 %v2811_v7  ;;  %v2215_v29 = vld [vmem:[#allocation5 + $0x388] sm:$0xf]  ;;  %v2512_v30 = vld [vmem:[#allocation5 + $0x394] sm:$0xf0]  ;;  %v2088_v34 = vor.u32 %v2480_v26, %v2087_v25  ;;  %v2137_v24 = vld [vmem:[#allocation5 + $0x2f8] sm:$0xf0] }
  0x7f   :  { %1298 = vmatpush.bf16.msra.mxu0 %v1880_v44  ;;  %1280 = vmatmul.bf16.vlgmr.msrb.gmra.mxu2 %v2793_v27  ;;  %v1815_v31 = vld [vmem:[#allocation5 + $0x68] sm:$0xf]  ;;  %v2412_v32 = vld [vmem:[#allocation5 + $0x74] sm:$0xf0]  ;;  %v2216_v36 = vor.u32 %v2512_v30, %v2215_v29  ;;  %v2522_v25 = vld [vmem:[#allocation5 + $0x3ec] sm:$0xf] }
  0x80   :  { %1311 = vmatpush.bf16.msra.mxu1 %v2008_v50  ;;  %1324 = vmatpush.bf16.msra.mxu2 %v2136_v52  ;;  %v1943_v35 = vld [vmem:[#allocation5 + $0x168] sm:$0xf]  ;;  %v2444_v8 = vld [vmem:[#allocation5 + $0x174] sm:$0xf0]  ;;  %v1816_v9 = vor.u32 %v2412_v32, %v1815_v31  ;;  %v2265_v26 = vld [vmem:[#allocation5 + $0x3f8] sm:$0xf0] }
  0x81   :  { %1337 = vmatpush.bf16.msra.mxu3 %v2264_v54  ;;  %v2071_v37 = vld [vmem:[#allocation5 + $0x268] sm:$0xf]  ;;  %v2476_v38 = vld [vmem:[#allocation5 + $0x274] sm:$0xf0]  ;;  %v1944_v41 = vor.u32 %v2444_v8, %v1943_v35  ;;  %v2422_v32 = vld [vmem:[#allocation5 + $0xcc] sm:$0xf]  ;;  %v2268_v35 = vor.u32 %v2522_v25, %v2265_v26 }
  0x82   :  { %1293 = vmatmul.bf16.vlgmr.msrb.gmra.mxu3 %v2829_v51  ;;  %v2199_v39 = vld [vmem:[#allocation5 + $0x368] sm:$0xf]  ;;  %v2508_v10 = vld [vmem:[#allocation5 + $0x374] sm:$0xf0]  ;;  %v2072_v42 = vor.u32 %v2476_v38, %v2071_v37  ;;  %v1993_v8 = vld [vmem:[#allocation5 + $0x1d8] sm:$0xf0] }
  0x83   :  { %1299 = vmatpush.bf16.msra.mxu0 %v1864_v58  ;;  %v1799_v40 = vld [vmem:[#allocation5 + $0x48] sm:$0xf]  ;;  %v2408_v11 = vld [vmem:[#allocation5 + $0x54] sm:$0xf0]  ;;  %v2200_v43 = vor.u32 %v2508_v10, %v2199_v39  ;;  %v2486_v37 = vld [vmem:[#allocation5 + $0x2cc] sm:$0xf] }
  0x84   :  { %1312 = vmatpush.bf16.msra.mxu1 %v1992_v63  ;;  %1325 = vmatpush.bf16.msra.mxu2 %v2120_v0  ;;  %v1927_v12 = vld [vmem:[#allocation5 + $0x148] sm:$0xf]  ;;  %v2440_v13 = vld [vmem:[#allocation5 + $0x154] sm:$0xf0]  ;;  %v1800_v45 = vor.u32 %v2408_v11, %v1799_v40  ;;  %v2121_v38 = vld [vmem:[#allocation5 + $0x2d8] sm:$0xf0] }
  0x85   :  { %1338 = vmatpush.bf16.msra.mxu3 %v2248_v2  ;;  %v2055_v44 = vld [vmem:[#allocation5 + $0x248] sm:$0xf]  ;;  %v2472_v14 = vld [vmem:[#allocation5 + $0x254] sm:$0xf0]  ;;  %v1928_v50 = vor.u32 %v2440_v13, %v1927_v12  ;;  %v2249_v39 = vld [vmem:[#allocation5 + $0x3d8] sm:$0xf0] }
  0x86   :  { %v2183_v15 = vld [vmem:[#allocation5 + $0x348] sm:$0xf]  ;;  %v2504_v47 = vld [vmem:[#allocation5 + $0x354] sm:$0xf0]  ;;  %v2056_v52 = vor.u32 %v2472_v14, %v2055_v44  ;;  %v2418_v11 = vld [vmem:[#allocation5 + $0xac] sm:$0xf] }
  0x87   :  { %1300 = vmatpush.bf16.msra.mxu0 %v1848_v6  ;;  %v1783_v48 = vld [vmem:[#allocation5 + $0x28] sm:$0xf]  ;;  %v2404_v49 = vld [vmem:[#allocation5 + $0x34] sm:$0xf0]  ;;  %v2184_v54 = vor.u32 %v2504_v47, %v2183_v15  ;;  %v1977_v13 = vld [vmem:[#allocation5 + $0x1b8] sm:$0xf0] }
  0x88   :  { %1313 = vmatpush.bf16.msra.mxu1 %v1976_v20  ;;  %1326 = vmatpush.bf16.msra.mxu2 %v2104_v21  ;;  %v1911_v53 = vld [vmem:[#allocation5 + $0x128] sm:$0xf]  ;;  %v2436_v55 = vld [vmem:[#allocation5 + $0x134] sm:$0xf0]  ;;  %v1784_v58 = vor.u32 %v2404_v49, %v1783_v48  ;;  %v2458_v20 = vld [vmem:[#allocation5 + $0x1ec] sm:$0xf] }
  0x89   :  { %1339 = vmatpush.bf16.msra.mxu3 %v2232_v23  ;;  %v2039_v56 = vld [vmem:[#allocation5 + $0x228] sm:$0xf]  ;;  %v2468_v57 = vld [vmem:[#allocation5 + $0x234] sm:$0xf0]  ;;  %v1912_v1 = vor.u32 %v2436_v55, %v1911_v53  ;;  %v2009_v21 = vld [vmem:[#allocation5 + $0x1f8] sm:$0xf0]  ;;  %v1884_v23 = vor.u32 %v2426_v4, %v1881_v5 }
  0x8a   :  { %v2167_v59 = vld [vmem:[#allocation5 + $0x328] sm:$0xf]  ;;  %v2500_v60 = vld [vmem:[#allocation5 + $0x334] sm:$0xf0]  ;;  %v2040_v2 = vor.u32 %v2468_v57, %v2039_v56  ;;  %v2012_v31 = vor.u32 %v2458_v20, %v2009_v21  ;;  %v2482_v44 = vld [vmem:[#allocation5 + $0x2ac] sm:$0xf] }
  0x8b   :  { %1301 = vmatpush.bf16.msra.mxu0 %v1832_v28  ;;  %1267 = vmatmul.bf16.vlgmr.msrb.gmra.mxu1 %v2839_v46  ;;  %v1767_v61 = vld [vmem:[#allocation5 + $0x8] sm:$0xf]  ;;  %v2400_v62 = vld [vmem:[#allocation5 + $0x14] sm:$0xf0]  ;;  %v2168_v6 = vor.u32 %v2500_v60, %v2167_v59  ;;  %v2105_v14 = vld [vmem:[#allocation5 + $0x2b8] sm:$0xf0] }
  0x8c   :  { %1314 = vmatpush.bf16.msra.mxu1 %v1960_v33  ;;  %1327 = vmatpush.bf16.msra.mxu2 %v2088_v34  ;;  %v1895_v63 = vld [vmem:[#allocation5 + $0x108] sm:$0xf]  ;;  %v2432_v0 = vld [vmem:[#allocation5 + $0x114] sm:$0xf0]  ;;  %v1768_v19 = vor.u32 %v2400_v62, %v1767_v61  ;;  %v1865_v33 = vld [vmem:[#allocation5 + $0xd8] sm:$0xf0]  ;;  %v2140_v34 = vor.u32 %v2490_v22, %v2137_v24 }
  0x8d   :  { %1340 = vmatpush.bf16.msra.mxu3 %v2216_v36  ;;  %v2023_v3 = vld [vmem:[#allocation5 + $0x208] sm:$0xf]  ;;  %v2464_v16 = vld [vmem:[#allocation5 + $0x214] sm:$0xf0]  ;;  %v1896_v28 = vor.u32 %v2432_v0, %v1895_v63  ;;  %v2454_v36 = vld [vmem:[#allocation5 + $0x1cc] sm:$0xf]  ;;  %v1868_v10 = vor.u32 %v2422_v32, %v1865_v33 }
  0x8e   :  { %v2151_v17 = vld [vmem:[#allocation5 + $0x308] sm:$0xf]  ;;  %v2496_v18 = vld [vmem:[#allocation5 + $0x314] sm:$0xf0]  ;;  %v2024_v29 = vor.u32 %v2464_v16, %v2023_v3  ;;  %v1996_v40 = vor.u32 %v2454_v36, %v1993_v8  ;;  %v2233_v15 = vld [vmem:[#allocation5 + $0x3b8] sm:$0xf0] }
  0x8f   :  { %1302 = vmatpush.bf16.msra.mxu0 %v1816_v9  ;;  %v2152_v30 = vor.u32 %v2496_v18, %v2151_v17  ;;  %v2518_v9 = vld [vmem:[#allocation5 + $0x3cc] sm:$0xf]  ;;  %v1961_v55 = vld [vmem:[#allocation5 + $0x198] sm:$0xf0] }
  0x90   :  { %1315 = vmatpush.bf16.msra.mxu1 %v1944_v41  ;;  %1328 = vmatpush.bf16.msra.mxu2 %v2072_v42  ;;  %v1849_v41 = vld [vmem:[#allocation5 + $0xb8] sm:$0xf0]  ;;  %v2124_v42 = vor.u32 %v2486_v37, %v2121_v38  ;;  %v2252_v12 = vor.u32 %v2518_v9, %v2249_v39  ;;  %v2414_v49 = vld [vmem:[#allocation5 + $0x8c] sm:$0xf] }
  0x91   :  { %1341 = vmatpush.bf16.msra.mxu3 %v2200_v43  ;;  %v2450_v43 = vld [vmem:[#allocation5 + $0x1ac] sm:$0xf]  ;;  %v1852_v47 = vor.u32 %v2418_v11, %v1849_v41  ;;  %v2089_v57 = vld [vmem:[#allocation5 + $0x298] sm:$0xf0] }
  0x92   :  { %v1980_v48 = vor.u32 %v2450_v43, %v1977_v13  ;;  %v2478_v56 = vld [vmem:[#allocation5 + $0x28c] sm:$0xf]  ;;  %v2217_v59 = vld [vmem:[#allocation5 + $0x398] sm:$0xf0] }
  0x93   :  { %1303 = vmatpush.bf16.msra.mxu0 %v1800_v45  ;;  %v2514_v45 = vld [vmem:[#allocation5 + $0x3ac] sm:$0xf]  ;;  %v1817_v63 = vld [vmem:[#allocation5 + $0x78] sm:$0xf0]  ;;  %v2092_v0 = vor.u32 %v2478_v56, %v2089_v57  ;;  %v2529_v56 = vld [vmem:[#allocation8 + $0x20] sm:$0xff] }
  0x94   :  { %1316 = vmatpush.bf16.msra.mxu1 %v1928_v50  ;;  %1329 = vmatpush.bf16.msra.mxu2 %v2056_v52  ;;  %v1833_v50 = vld [vmem:[#allocation5 + $0x98] sm:$0xf0]  ;;  %v2108_v52 = vor.u32 %v2482_v44, %v2105_v14  ;;  %v2236_v53 = vor.u32 %v2514_v45, %v2233_v15  ;;  %v2410_v62 = vld [vmem:[#allocation5 + $0x6c] sm:$0xf]  ;;  %v2539_v57 = vld [vmem:[#allocation8 + $0x70] sm:$0xff] }
  0x95   :  { %1342 = vmatpush.bf16.msra.mxu3 %v2184_v54  ;;  %v2446_v54 = vld [vmem:[#allocation5 + $0x18c] sm:$0xf]  ;;  %v1836_v60 = vor.u32 %v2414_v49, %v1833_v50  ;;  %v1945_v3 = vld [vmem:[#allocation5 + $0x178] sm:$0xf0]  ;;  %v1820_v17 = vor.u32 %v2410_v62, %v1817_v63  ;;  %v2535_v63 = vld [vmem:[#allocation8 + $0x50] sm:$0xff] }
  0x96   :  { %v1964_v61 = vor.u32 %v2446_v54, %v1961_v55  ;;  %v2474_v4 = vld [vmem:[#allocation5 + $0x26c] sm:$0xf]  ;;  %v2073_v5 = vld [vmem:[#allocation5 + $0x278] sm:$0xf0]  ;;  %v2531_v54 = vld [vmem:[#allocation8 + $0x30] sm:$0xff] }
  0x97   :  { %1304 = vmatpush.bf16.msra.mxu0 %v1784_v58  ;;  %v2510_v58 = vld [vmem:[#allocation5 + $0x38c] sm:$0xf]  ;;  %v2201_v16 = vld [vmem:[#allocation5 + $0x378] sm:$0xf0]  ;;  %v2076_v21 = vor.u32 %v2474_v4, %v2073_v5  ;;  %v2533_v4 = vld [vmem:[#allocation8 + $0x40] sm:$0xff] }
  0x98   :  { %1317 = vmatpush.bf16.msra.mxu1 %v1912_v1  ;;  %1330 = vmatpush.bf16.msra.mxu2 %v2040_v2  ;;  %v2220_v1 = vor.u32 %v2510_v58, %v2217_v59  ;;  %v2442_v2 = vld [vmem:[#allocation5 + $0x16c] sm:$0xf]  ;;  %v1801_v20 = vld [vmem:[#allocation5 + $0x58] sm:$0xf0] }
  0x99   :  { %1343 = vmatpush.bf16.msra.mxu3 %v2168_v6  ;;  %v2506_v6 = vld [vmem:[#allocation5 + $0x36c] sm:$0xf]  ;;  %v1948_v18 = vor.u32 %v2442_v2, %v1945_v3  ;;  %v1929_v24 = vld [vmem:[#allocation5 + $0x158] sm:$0xf0]  ;;  %v2854_v3 = vld [vmem:[#allocation7] sm:$0xf] }
  0x9a   :  { %v2204_v22 = vor.u32 %v2506_v6, %v2201_v16  ;;  %v2470_v25 = vld [vmem:[#allocation5 + $0x24c] sm:$0xf]  ;;  %v2057_v26 = vld [vmem:[#allocation5 + $0x258] sm:$0xf0]  ;;  %v411_v6 = vperm.slane %v2854_v3, 0  ;;  %v2547_v16 = vld [vmem:[#allocation8 + $0xb0] sm:$0xff] }
  0x9b   :  { %1305 = vmatpush.bf16.msra.mxu0 %v1768_v19  ;;  %v2406_v19 = vld [vmem:[#allocation5 + $0x4c] sm:$0xf]  ;;  %v1785_v33 = vld [vmem:[#allocation5 + $0x38] sm:$0xf0] }
  0x9c   :  { %1318 = vmatpush.bf16.msra.mxu1 %v1896_v28  ;;  %1331 = vmatpush.bf16.msra.mxu2 %v2024_v29  ;;  %v2502_v28 = vld [vmem:[#allocation5 + $0x34c] sm:$0xf]  ;;  %v2185_v29 = vld [vmem:[#allocation5 + $0x358] sm:$0xf0] }
  0x9d   :  { %1344 = vmatpush.bf16.msra.mxu3 %v2152_v30  ;;  %v1804_v30 = vor.u32 %v2406_v19, %v1801_v20  ;;  %v2402_v32 = vld [vmem:[#allocation5 + $0x2c] sm:$0xf]  ;;  %v1913_v8 = vld [vmem:[#allocation5 + $0x138] sm:$0xf0] }
  0x9e   :  { %1306 = vmatmul.bf16.vlgmr.msra.gmra.mxu0 %v2811_v7  ;;  %v2434_v36 = vld [vmem:[#allocation5 + $0x12c] sm:$0xf]  ;;  %v2041_v38 = vld [vmem:[#allocation5 + $0x238] sm:$0xf0] }
  0x9f   :  { %1350 = vmatpush.bf16.msrb.mxu0 %v1884_v23  ;;  %1332 = vmatmul.bf16.vlgmr.msra.gmra.mxu2 %v2793_v27  ;;  %v2438_v23 = vld [vmem:[#allocation5 + $0x14c] sm:$0xf]  ;;  %v2169_v39 = vld [vmem:[#allocation5 + $0x338] sm:$0xf0] }
  0xa0   :  { %1363 = vmatpush.bf16.msrb.mxu1 %v2012_v31  ;;  %1376 = vmatpush.bf16.msrb.mxu2 %v2140_v34  ;;  %v1932_v31 = vor.u32 %v2438_v23, %v1929_v24  ;;  %v2060_v34 = vor.u32 %v2470_v25, %v2057_v26  ;;  %v2466_v37 = vld [vmem:[#allocation5 + $0x22c] sm:$0xf]  ;;  %v1769_v41 = vld [vmem:[#allocation5 + $0x18] sm:$0xf0] }
  0xa1   :  { %1389 = vmatpush.bf16.msrb.mxu3 %v2268_v35  ;;  %1319 = vmatmul.bf16.vlgmr.msra.gmra.mxu1 %v2839_v46  ;;  %v2188_v35 = vor.u32 %v2502_v28, %v2185_v29  ;;  %v2498_v9 = vld [vmem:[#allocation5 + $0x32c] sm:$0xf]  ;;  %v1897_v13 = vld [vmem:[#allocation5 + $0x118] sm:$0xf0] }
  0xa2   :  { %1345 = vmatmul.bf16.vlgmr.msra.gmra.mxu3 %v2829_v51  ;;  %v2398_v11 = vld [vmem:[#allocation5 + $0xc] sm:$0xf]  ;;  %v2025_v14 = vld [vmem:[#allocation5 + $0x218] sm:$0xf0] }
  0xa3   :  { %1351 = vmatpush.bf16.msrb.mxu0 %v1868_v10  ;;  %v1788_v10 = vor.u32 %v2402_v32, %v1785_v33  ;;  %v2430_v43 = vld [vmem:[#allocation5 + $0x10c] sm:$0xf]  ;;  %v2153_v15 = vld [vmem:[#allocation5 + $0x318] sm:$0xf0]  ;;  %v412_v32 = vperm.slane %v2854_v3, 1  ;;  %v2543_v33 = vld [vmem:[#allocation8 + $0x90] sm:$0xff] }
  0xa4   :  { %1364 = vmatpush.bf16.msrb.mxu1 %v1996_v40  ;;  %1377 = vmatpush.bf16.msrb.mxu2 %v2124_v42  ;;  %v1916_v40 = vor.u32 %v2434_v36, %v1913_v8  ;;  %v2044_v42 = vor.u32 %v2466_v37, %v2041_v38  ;;  %v2462_v44 = vld [vmem:[#allocation5 + $0x20c] sm:$0xf]  ;;  %v2532_v49 = vld [vmem:[#allocation8 + $0x38] sm:$0xff] }
  0xa5   :  { %1390 = vmatpush.bf16.msrb.mxu3 %v2252_v12  ;;  %v2172_v12 = vor.u32 %v2498_v9, %v2169_v39  ;;  %v2494_v45 = vld [vmem:[#allocation5 + $0x30c] sm:$0xf]  ;;  %v2028_v50 = vor.u32 %v2462_v44, %v2025_v14  ;;  %v2528_v58 = vld [vmem:[#allocation8 + $0x18] sm:$0xff] }
  0xa6   :  { %v2530_v55 = vld [vmem:[#allocation8 + $0x28] sm:$0xff]  ;;  %v2548_v5 = vld [vmem:[#allocation8 + $0xb8] sm:$0xff] }
  0xa7   :  { %1352 = vmatpush.bf16.msrb.mxu0 %v1852_v47  ;;  %v1772_v47 = vor.u32 %v2398_v11, %v1769_v41  ;;  %v2538_v59 = vld [vmem:[#allocation8 + $0x68] sm:$0xff]  ;;  %v2544_v28 = vld [vmem:[#allocation8 + $0x98] sm:$0xff] }
  0xa8   :  { %1365 = vmatpush.bf16.msrb.mxu1 %v1980_v48  ;;  %1378 = vmatpush.bf16.msrb.mxu2 %v2108_v52  ;;  %v1900_v48 = vor.u32 %v2430_v43, %v1897_v13  ;;  %v2156_v52 = vor.u32 %v2494_v45, %v2153_v15  ;;  %v2546_v19 = vld [vmem:[#allocation8 + $0xa8] sm:$0xff]  ;;  %v2556_v38 = vld [vmem:[#allocation8 + $0xf8] sm:$0xff]  ;;  %v2553_v45 = vld [vmem:[#allocation8 + $0xe0] sm:$0xff]  ;;  %v413_v15 = vperm.slane %v2854_v3, 2 }
  0xa9   :  { %1391 = vmatpush.bf16.msrb.mxu3 %v2236_v53  ;;  %v2540_v53 = vld [vmem:[#allocation8 + $0x78] sm:$0xff]  ;;  %v2542_v37 = vld [vmem:[#allocation8 + $0x88] sm:$0xff] }
  0xaa   :  { %v2554_v43 = vld [vmem:[#allocation8 + $0xe8] sm:$0xff] }
  0xab   :  { %1353 = vmatpush.bf16.msrb.mxu0 %v1836_v60  ;;  %v2527_v60 = vld [vmem:[#allocation8 + $0x10] sm:$0xff] }
  0xac   :  { %1366 = vmatpush.bf16.msrb.mxu1 %v1964_v61  ;;  %1379 = vmatpush.bf16.msrb.mxu2 %v2092_v0 }
  0xad   :  { %1392 = vmatpush.bf16.msrb.mxu3 %v2220_v1  ;;  %v2534_v1 = vld [vmem:[#allocation8 + $0x48] sm:$0xff] }
  0xaf   :  { %1354 = vmatpush.bf16.msrb.mxu0 %v1820_v17 }
  0xb0   :  { %1367 = vmatpush.bf16.msrb.mxu1 %v1948_v18  ;;  %1380 = vmatpush.bf16.msrb.mxu2 %v2076_v21 }
  0xb1   :  { %1393 = vmatpush.bf16.msrb.mxu3 %v2204_v22  ;;  %v2545_v22 = vld [vmem:[#allocation8 + $0xa0] sm:$0xff] }
  0xb3   :  { %1355 = vmatpush.bf16.msrb.mxu0 %v1804_v30 }
  0xb4   :  { %1368 = vmatpush.bf16.msrb.mxu1 %v1932_v31  ;;  %1381 = vmatpush.bf16.msrb.mxu2 %v2060_v34 }
  0xb5   :  { %1394 = vmatpush.bf16.msrb.mxu3 %v2188_v35 }
  0xb7   :  { %1356 = vmatpush.bf16.msrb.mxu0 %v1788_v10  ;;  %v2541_v10 = vld [vmem:[#allocation8 + $0x80] sm:$0xff] }
  0xb8   :  { %1369 = vmatpush.bf16.msrb.mxu1 %v1916_v40  ;;  %1382 = vmatpush.bf16.msrb.mxu2 %v2044_v42  ;;  %v2555_v40 = vld [vmem:[#allocation8 + $0xf0] sm:$0xff] }
  0xb9   :  { %1395 = vmatpush.bf16.msrb.mxu3 %v2172_v12 }
  0xbb   :  { %1357 = vmatpush.bf16.msrb.mxu0 %v1772_v47  ;;  %v2552_v47 = vld [vmem:[#allocation8 + $0xd8] sm:$0xff] }
  0xbc   :  { %1370 = vmatpush.bf16.msrb.mxu1 %v1900_v48  ;;  %1383 = vmatpush.bf16.msrb.mxu2 %v2028_v50  ;;  %v2551_v50 = vld [vmem:[#allocation8 + $0xd0] sm:$0xff] }
  0xbd   :  { %1396 = vmatpush.bf16.msrb.mxu3 %v2156_v52 }
  0xbe   :  { %1358 = vmatmul.bf16.vlgmr.msrb.gmra.mxu0 %v2811_v7  ;;  %v2537_v7 = vld [vmem:[#allocation8 + $0x60] sm:$0xff] }
  0xbf   :  { %1670 = vmatpush.bf16.msra.mxu0 %v2532_v49  ;;  %1371 = vmatmul.bf16.vlgmr.msrb.gmra.mxu1 %v2839_v46  ;;  %v2526_v46 = vld [vmem:[#allocation8 + $0x8] sm:$0xff] }
  0xc0   :  { %1683 = vmatpush.bf16.msra.mxu1 %v2540_v53  ;;  %1384 = vmatmul.bf16.vlgmr.msrb.gmra.mxu2 %v2793_v27  ;;  %v2536_v27 = vld [vmem:[#allocation8 + $0x58] sm:$0xff] }
  0xc1   :  { %1397 = vmatmul.bf16.vlgmr.msrb.gmra.mxu3 %v2829_v51  ;;  %v2525_v51 = vld [vmem:[#allocation8] sm:$0xff]  ;;  %1696 = vmatpush.bf16.msra.mxu2 %v2548_v5 }
  0xc2   :  { %1709 = vmatpush.bf16.msra.mxu3 %v2556_v38 }
  0xc3   :  { %1671 = vmatpush.bf16.msra.mxu0 %v2531_v54 }
  0xc4   :  { %1684 = vmatpush.bf16.msra.mxu1 %v2539_v57 }
  0xc5   :  { %1697 = vmatpush.bf16.msra.mxu2 %v2547_v16 }
  0xc6   :  { %1710 = vmatpush.bf16.msra.mxu3 %v2555_v40 }
  0xc7   :  { %1672 = vmatpush.bf16.msra.mxu0 %v2530_v55 }
  0xc8   :  { %1685 = vmatpush.bf16.msra.mxu1 %v2538_v59  ;;  %v2550_v59 = vld [vmem:[#allocation8 + $0xc8] sm:$0xff] }
  0xc9   :  { %1698 = vmatpush.bf16.msra.mxu2 %v2546_v19 }
  0xca   :  { %1711 = vmatpush.bf16.msra.mxu3 %v2554_v43 }
  0xcb   :  { %1673 = vmatpush.bf16.msra.mxu0 %v2529_v56 }
  0xcc   :  { %1686 = vmatpush.bf16.msra.mxu1 %v2537_v7 }
  0xcd   :  { %1699 = vmatpush.bf16.msra.mxu2 %v2545_v22 }
  0xce   :  { %1712 = vmatpush.bf16.msra.mxu3 %v2553_v45 }
  0xcf   :  { %1674 = vmatpush.bf16.msra.mxu0 %v2528_v58 }
  0xd0   :  { %1687 = vmatpush.bf16.msra.mxu1 %v2536_v27 }
  0xd1   :  { %1700 = vmatpush.bf16.msra.mxu2 %v2544_v28 }
  0xd2   :  { %1713 = vmatpush.bf16.msra.mxu3 %v2552_v47 }
  0xd3   :  { %1675 = vmatpush.bf16.msra.mxu0 %v2527_v60 }
  0xd4   :  { %1688 = vmatpush.bf16.msra.mxu1 %v2535_v63 }
  0xd5   :  { %1701 = vmatpush.bf16.msra.mxu2 %v2543_v33 }
  0xd6   :  { %1714 = vmatpush.bf16.msra.mxu3 %v2551_v50 }
  0xd7   :  { %1676 = vmatpush.bf16.msra.mxu0 %v2526_v46 }
  0xd8   :  { %1689 = vmatpush.bf16.msra.mxu1 %v2534_v1 }
  0xd9   :  { %1702 = vmatpush.bf16.msra.mxu2 %v2542_v37 }
  0xda   :  { %1715 = vmatpush.bf16.msra.mxu3 %v2550_v59 }
  0xdb   :  { %1677 = vmatpush.bf16.msra.mxu0 %v2525_v51 }
  0xdc   :  { %1690 = vmatpush.bf16.msra.mxu1 %v2533_v4 }
  0xdd   :  { %1703 = vmatpush.bf16.msra.mxu2 %v2541_v10 }
  0xdf   :  { %v1229_v61 = vpop.f32.mrf.mxu2 }
  0xe4   :  { %v1203_v62 = vpop.f32.mrf.mxu0 }
  0xe5   :  { %v1204_v18 = vadd.f32 %v1203_v62, %v411_v6  ;;  %v414_v62 = vperm.slane %v2854_v3, 3 }
  0xe7   :  { %v1231_v0 = vpop.f32.mrf.mxu2 }
  0xec   :  { %v1205_v2 = vpop.f32.mrf.mxu0 }
  0xf4   :  { %v1242_v17 = vpop.f32.mrf.mxu3 }
  0xf8   :  { %v1216_v20 = vpop.f32.mrf.mxu1 }
  0xf9   :  { %v1217_v21 = vadd.f32 %v1216_v20, %v1204_v18 }
  0xfb   :  { %v1230_v23 = vadd.f32 %v1229_v61, %v1217_v21  ;;  %v1255_v25 = vpop.f32.mrf.mxu0  ;;  %v2549_v61 = vld [vmem:[#allocation8 + $0xc0] sm:$0xff] }
  0xfc   :  { %v1244_v24 = vpop.f32.mrf.mxu3  ;;  %v1256_v8 = vadd.f32 %v1255_v25, %v412_v32  ;;  %1716 = vmatpush.bf16.msra.mxu3 %v2549_v61 }
  0xfd   :  { %v1243_v26 = vadd.f32 %v1242_v17, %v1230_v23 }
  0xff   :  { %v1402_v29 = vmax.f32 %v1243_v26, 0.0 }
 0x100   :  { %v1218_v30 = vpop.f32.mrf.mxu1 }
 0x101   :  { %v1406_v31 = vpack.c.bf16 %v1402_v29, %v1402_v29  ;;  %v2566_v29 = vld [vmem:[%s2870_s4] ss:$0 sm:$0xff]  ;;  %s2705_s4 = smov [#allocation10]  }
 0x102   :  { %v1281_v34 = vpop.f32.mrf.mxu2  ;;  %s1743_s15 = sshll.u32 %s2705_s4, 4  ;;  %s1744_s15 = int_to_ptr.vmem [resolvable:$true] %s1743_s15 }
 0x103   :  { %1678 = vmatmul.bf16.vlgmr.msra.gmra.mxu0 %v1406_v31  ;;  %v1257_v36 = vpop.f32.mrf.mxu0 }
 0x105   :  { %v1294_v35 = vpop.f32.mrf.mxu3 }
 0x108   :  { %v1268_v9 = vpop.f32.mrf.mxu1 }
 0x109   :  { %v1269_v39 = vadd.f32 %v1268_v9, %v1256_v8 }
 0x10a   :  { %v1283_v41 = vpop.f32.mrf.mxu2 }
 0x10b   :  { %v1282_v11 = vadd.f32 %v1281_v34, %v1269_v39 }
 0x10d   :  { %v1296_v42 = vpop.f32.mrf.mxu3  ;;  %v1295_v12 = vadd.f32 %v1294_v35, %v1282_v11 }
 0x10f   :  { %v1403_v13 = vmax.f32 %v1295_v12, 0.0 }
 0x110   :  { %v1270_v44 = vpop.f32.mrf.mxu1 }
 0x111   :  { %v1407_v14 = vpack.c.bf16 %v1403_v13, %v1403_v13 }
 0x113   :  { %1691 = vmatmul.bf16.vlgmr.msra.gmra.mxu1 %v1407_v14 }
 0x11b   :  { %v1307_v48 = vpop.f32.mrf.mxu0 }
 0x11c   :  { %v1308_v49 = vadd.f32 %v1307_v48, %v413_v15 }
 0x11e   :  { %v1320_v52 = vpop.f32.mrf.mxu1 }
 0x11f   :  { %v1321_v53 = vadd.f32 %v1320_v52, %v1308_v49 }
 0x122   :  { %v1333_v54 = vpop.f32.mrf.mxu2 }
 0x123   :  { %v1334_v55 = vadd.f32 %v1333_v54, %v1321_v53  ;;  %v1309_v57 = vpop.f32.mrf.mxu0 }
 0x125   :  { %v1346_v56 = vpop.f32.mrf.mxu3 }
 0x126   :  { %v1347_v58 = vadd.f32 %v1346_v56, %v1334_v55  ;;  %v1322_v7 = vpop.f32.mrf.mxu1 }
 0x128   :  { %v1404_v60 = vmax.f32 %v1347_v58, 0.0 }
 0x12a   :  { %v1408_v46 = vpack.c.bf16 %v1404_v60, %v1404_v60  ;;  %v1335_v27 = vpop.f32.mrf.mxu2 }
 0x12c   :  { %1704 = vmatmul.bf16.vlgmr.msra.gmra.mxu2 %v1408_v46 }
 0x12d   :  { %v1348_v51 = vpop.f32.mrf.mxu3 }
 0x13b   :  { %v1359_v63 = vpop.f32.mrf.mxu0 }
 0x13c   :  { %v1360_v0 = vadd.f32 %v1359_v63, %v414_v62  ;;  %v1372_v1 = vpop.f32.mrf.mxu1 }
 0x13e   :  { %v1373_v2 = vadd.f32 %v1372_v1, %v1360_v0 }
 0x143   :  { %v1385_v4 = vpop.f32.mrf.mxu2  ;;  %v1361_v16 = vpop.f32.mrf.mxu0 }
 0x144   :  { %v1398_v5 = vpop.f32.mrf.mxu3  ;;  %v1386_v6 = vadd.f32 %v1385_v4, %v1373_v2  ;;  %v1374_v17 = vpop.f32.mrf.mxu1 }
 0x146   :  { %v1399_v18 = vadd.f32 %v1398_v5, %v1386_v6 }
 0x148   :  { %v1405_v19 = vmax.f32 %v1399_v18, 0.0 }
 0x14a   :  { %v1409_v20 = vpack.c.bf16 %v1405_v19, %v1405_v19 }
 0x14b   :  { %v1387_v21 = vpop.f32.mrf.mxu2 }
 0x14c   :  { %v1400_v22 = vpop.f32.mrf.mxu3  ;;  %1717 = vmatmul.bf16.vlgmr.msra.gmra.mxu3 %v1409_v20 }
 0x180   :  { %v1679_v23 = vpop.f32.mrf.mxu0 }
 0x181   :  { %v1680_v30 = vadd.f32 %v2566_v29, %v1679_v23 }
 0x188   :  { %v1681_v24 = vpop.f32.mrf.mxu0 }
 0x190   :  { %v1692_v25 = vpop.f32.mrf.mxu1 }
 0x191   :  { %v1693_v31 = vadd.f32 %v1692_v25, %v1680_v30 }
 0x198   :  { %v1694_v26 = vpop.f32.mrf.mxu1 }
 0x1af   :  { %v1705_v3 = vpop.f32.mrf.mxu2 }
 0x1b0   :  { %v1706_v32 = vadd.f32 %v1705_v3, %v1693_v31 }
 0x1b7   :  { %v1707_v28 = vpop.f32.mrf.mxu2 }
 0x1cf   :  { %v1718_v33 = vpop.f32.mrf.mxu3 }
 0x1d0   :  { %v1719_v34 = vadd.f32 %v1718_v33, %v1706_v32 }
 0x1d2   :  { %v1722_v35 = vmul.f32 %v1719_v34, %v1719_v34 }
 0x1d4   :  { %1723 = vadd.xlane.f32.xlu0 %v1722_v35 }
 0x1d7   :  { %v1720_v36 = vpop.f32.mrf.mxu3 }
 0x247   :  { %v1724_v8 = vpop.xlane.xlu0 %1723 }
 0x248   :  { %v1725_v37 = vmax.f32 %v1724_v8, 1e-24 }
 0x24a   :  { %2567 = vrsqrt.f32 %v1725_v37  ;;  %vm1732_vm8 = vweird.f32 %v1725_v37 }
 0x250   :  { %v2568_v38 = vpop.eup %2567 }
 0x251   :  { %v1727_v9 = vmul.f32 %v2568_v38, %v1725_v37  ;;  %vm1733_vm7 = vweird.f32 %v2568_v38 }
 0x252   :  { %vm1734_vm9 = vmor %vm1732_vm8, %vm1733_vm7 }
 0x253   :  { %v1728_v39 = vmul.f32 %v2568_v38, %v1727_v9 }
 0x255   :  { %v1729_v10 = vmul.f32 0.5, %v1728_v39 }
 0x257   :  { %v1730_v40 = vsub.f32 1.5, %v1729_v10 }
 0x259   :  { %v1731_v11 = vmul.f32 %v2568_v38, %v1730_v40 }
 0x25b   :  { %v1735_v41 = vsel %vm1734_vm9, %v2568_v38, %v1731_v11 }
 0x25c   :  { %v1736_v42 = vmul.f32 %v1735_v41, %v1719_v34 }
 0x25e   :  { %1737 = vst [vmem:[#allocation10] sm:$0xff] %v1736_v42 }
 0x25f   :  { %1748 = dma.vmem_to_hbm [thread:$0]  %s1744_s15, 128, %s1746_s18, [#allocation4]  }
 0x260   :  { %2695 = dma.done.wait [#allocation4], 128  }
 0x261   :  { %2696 = vsyncadd [#allocation4], 4294967168 }
 0x262   :  { %1753 = vsyncpa [#allocation3], 1 }
 0x263   :  { %1754 = vsyncpa [#allocation6], 1 }
 0x264   :  { %1755 = vsyncpa [#allocation9], 1 }
 0x265   :  { %1756 = vsyncpa [#allocation4], 1 }

</bundles_post_ra>
